<compile_context>
chip_gen: v5e
topology: v5e:2x2
jax: 0.10.0
libtpu: 0.0.40
codegen_flags: <defaults>
</compile_context>

<pallas_src>
import functools

import numpy as np
import jax
import jax.numpy as jnp
from jax import lax
from jax.experimental import pallas as pl
from jax.experimental.pallas import tpu as pltpu

LANE = 128


def _round_up(x, m):
    return ((x + m - 1) // m) * m


def _pad_lane(c):
    return _round_up(max(c, 1), LANE)


def _interior_mask(s, H, W, Hq, Wq, nrows):
    """(nrows, 1) f32 {0,1}: 1 where the phase-layout flat index maps to an
    interior (non zero-padding) pixel of the spatially padded image."""
    core = s * s * Hq * Wq
    idx = np.arange(core)
    f, rem = idx // (Hq * Wq), idx % (Hq * Wq)
    row, col = rem // Wq, rem % Wq
    pi = row * s + f // s
    pj = col * s + f % s
    m = np.zeros((nrows,), np.float32)
    m[:core] = ((pi >= 1) & (pi <= H) & (pj >= 1) & (pj <= W)).astype(np.float32)
    return jnp.asarray(m.reshape(nrows, 1))


# ---------------------------------------------------------------------------
# The single fused Bottleneck kernel (one grid step = one batch element).
# ---------------------------------------------------------------------------
def _bottleneck_kernel(*refs, stride, Hq, Wq, OH, downsample):
    if downsample:
        (x_ref, mask_ref, w1_ref, w2_ref, w3_ref, wd_ref,
         bn12_ref, bn3d_ref, o_ref, h1s_ref, acc2_ref) = refs
    else:
        (x_ref, mask_ref, w1_ref, w2_ref, w3_ref,
         bn12_ref, bn3d_ref, o_ref, h1s_ref, acc2_ref) = refs
        wd_ref = None

    s = stride
    phsz = Hq * Wq
    M2 = OH * Wq                      # conv2/conv3 rows at full (padded) width

    # ---- conv1 (1x1) + bn1 + relu (pointwise -> stays in phase layout) -----
    a1 = x_ref[0]                                              # (NROWS, Cin) bf16
    h1 = jnp.dot(a1, w1_ref[...], preferred_element_type=jnp.float32)
    h1 = jnp.maximum(h1 * bn12_ref[0:1, :] + bn12_ref[1:2, :], 0.0)
    h1 = h1 * mask_ref[...]           # force the zero-padding ring to exactly 0
    h1s_ref[...] = h1.astype(h1s_ref.dtype)                    # bf16, VMEM only

    # ---- conv2 (3x3, stride s, pad 1) + bn2 + relu: 9 shifted matmuls ------
    # Each tap reads a contiguous sublane window of the phase-layout h1 at
    # full row width (Wq columns); columns >= OW are garbage and are dropped
    # at the output store.  In-place accumulation into an f32 VMEM scratch
    # bounds the per-tap live set to one window + one MXU result.
    for t in range(9):
        di, dj = t // 3, t % 3
        start = ((di % s) * s + (dj % s)) * phsz + (di // s) * Wq + (dj // s)
        a = h1s_ref[pl.ds(start, M2), :]                       # (M2, Cm_p) bf16
        contrib = jnp.dot(a, w2_ref[t], preferred_element_type=jnp.float32)
        if t == 0:
            acc2_ref[...] = contrib
        else:
            acc2_ref[...] += contrib
    h2 = jnp.maximum(acc2_ref[...] * bn12_ref[2:3, :] + bn12_ref[3:4, :], 0.0)
    h2 = h2.astype(jnp.bfloat16)

    # ---- conv3 (1x1) + bn3 --------------------------------------------------
    y = jnp.dot(h2, w3_ref[...], preferred_element_type=jnp.float32)
    y = y * bn3d_ref[0:1, :] + bn3d_ref[1:2, :]

    # ---- identity / downsample path (read straight from the phase input) ---
    id_start = ((1 % s) * s + (1 % s)) * phsz + (1 // s) * Wq + (1 // s)
    xa = x_ref[0, pl.ds(id_start, M2), :]                      # (M2, Cin) bf16
    if downsample:
        ident = jnp.dot(xa, wd_ref[...], preferred_element_type=jnp.float32)
        ident = ident * bn3d_ref[2:3, :] + bn3d_ref[3:4, :]
    else:
        ident = xa.astype(jnp.float32)
        pad_c = y.shape[-1] - ident.shape[-1]
        if pad_c:
            ident = jnp.pad(ident, ((0, 0), (0, pad_c)))

    # ---- residual add + relu, single lane-dense store ------------------------
    o_ref[0] = jnp.maximum(y + ident, 0.0).astype(o_ref.dtype)


# ---------------------------------------------------------------------------
# Parameters (deterministic, in-script).  BN folded to scale/bias (eval mode).
# ---------------------------------------------------------------------------
def fold_bn(gamma, beta, mean, var, eps=1e-5):
    scale = gamma / jnp.sqrt(var + eps)
    bias = beta - mean * scale
    return scale, bias


def _pad1(v, n):
    return jnp.pad(v, ((0, n - v.shape[0]),))


def build_bottleneck_params(key, in_ch, out_ch, stride, downsample):
    exp = 4
    out_exp = exp * out_ch
    cm_p, ce_p = _pad_lane(out_ch), _pad_lane(out_exp)
    ks = jax.random.split(key, 8)

    def kaiming(k, kh, kw, ci, co):
        w = jax.random.normal(k, (kh, kw, ci, co), jnp.float32)
        return (w * jnp.sqrt(2.0 / (kh * kw * ci))).astype(jnp.bfloat16)

    def bn_params(k, c):
        k1, k2, k3, k4 = jax.random.split(k, 4)
        gamma = jax.random.uniform(k1, (c,), jnp.float32, 0.5, 1.5)
        beta = 0.1 * jax.random.normal(k2, (c,), jnp.float32)
        mean = 0.1 * jax.random.normal(k3, (c,), jnp.float32)
        var = jax.random.uniform(k4, (c,), jnp.float32, 0.5, 1.5)
        return gamma, beta, mean, var

    w1 = kaiming(ks[0], 1, 1, in_ch, out_ch)
    w2 = kaiming(ks[1], 3, 3, out_ch, out_ch)
    w3 = kaiming(ks[2], 1, 1, out_ch, out_exp)
    bn1, bn2, bn3 = (bn_params(ks[3], out_ch), bn_params(ks[4], out_ch),
                     bn_params(ks[5], out_exp))

    p = {"stride": stride, "in_ch": in_ch, "out_ch": out_ch, "out_exp": out_exp,
         "cm_p": cm_p, "ce_p": ce_p, "downsample": bool(downsample),
         "ref": {"w1": w1, "w2": w2, "w3": w3, "bn1": bn1, "bn2": bn2, "bn3": bn3}}

    s1, b1 = fold_bn(*bn1)
    s2, b2 = fold_bn(*bn2)
    s3, b3 = fold_bn(*bn3)

    # Kernel-side weights: channels that face lane-padded VMEM intermediates
    # are zero-padded to a lane multiple; the x / residual input channels stay
    # UNPADDED (padding lives only inside VMEM).
    p["w1_mm"] = jnp.pad(w1.reshape(in_ch, out_ch), ((0, 0), (0, cm_p - out_ch)))
    p["w2_mm"] = jnp.pad(w2.reshape(9, out_ch, out_ch),
                         ((0, 0), (0, cm_p - out_ch), (0, cm_p - out_ch)))
    p["w3_mm"] = jnp.pad(w3.reshape(out_ch, out_exp),
                         ((0, cm_p - out_ch), (0, ce_p - out_exp)))
    p["bn12"] = jnp.stack([_pad1(s1, cm_p), _pad1(b1, cm_p),
                           _pad1(s2, cm_p), _pad1(b2, cm_p)]).astype(jnp.float32)

    if downsample:
        wd = kaiming(ks[6], 1, 1, in_ch, out_exp)
        bnd = bn_params(ks[7], out_exp)
        sd, bd = fold_bn(*bnd)
        p["ref"]["wd"], p["ref"]["bnd"] = wd, bnd
        p["wd_mm"] = jnp.pad(wd.reshape(in_ch, out_exp),
                             ((0, 0), (0, ce_p - out_exp)))
        p["bn3d"] = jnp.stack([_pad1(s3, ce_p), _pad1(b3, ce_p),
                               _pad1(sd, ce_p), _pad1(bd, ce_p)]).astype(jnp.float32)
    else:
        zeros = jnp.zeros((ce_p,), jnp.float32)
        p["bn3d"] = jnp.stack([_pad1(s3, ce_p), _pad1(b3, ce_p),
                               zeros, zeros]).astype(jnp.float32)
    return p


# ---------------------------------------------------------------------------
# Bottleneck forward (one fused pallas_call) and plain-JAX reference.
# ---------------------------------------------------------------------------
def bottleneck_forward(x_nchw, p):
    s = int(p["stride"])
    out_exp, cm_p, ce_p = p["out_exp"], p["cm_p"], p["ce_p"]
    B, cin, H, W = x_nchw.shape
    OH = (H - 1) // s + 1
    OW = (W - 1) // s + 1
    Hq = -(-(H + 2) // s)
    Wq = -(-(W + 2) // s)
    phsz = Hq * Wq
    core = s * s * phsz
    nrows = _round_up(core + 2, 8)    # +2: tap windows may run ≤2 rows past the
                                      # last phase (affects discarded cols only)
    M2 = OH * Wq

    # One cheap XLA prologue on the small, channel-UNPADDED input:
    # NCHW->NHWC, 1-px halo pad, space-to-depth into stride^2 phases (identity
    # when stride==1), bf16 cast, flatten.  Everything downstream is in-kernel.
    x = jnp.transpose(x_nchw, (0, 2, 3, 1))
    xp = jnp.pad(x, ((0, 0), (1, s * Hq - H - 1), (1, s * Wq - W - 1), (0, 0)))
    xph = xp.reshape(B, Hq, s, Wq, s, cin).transpose(0, 2, 4, 1, 3, 5)
    xph = xph.reshape(B, core, cin)
    xph = jnp.pad(xph, ((0, 0), (0, nrows - core), (0, 0))).astype(jnp.bfloat16)

    mask = _interior_mask(s, H, W, Hq, Wq, nrows)

    args = [xph, mask, p["w1_mm"], p["w2_mm"], p["w3_mm"]]
    in_specs = [
        pl.BlockSpec((1, nrows, cin), lambda b: (b, 0, 0)),
        pl.BlockSpec((nrows, 1), lambda b: (0, 0)),
        pl.BlockSpec(p["w1_mm"].shape, lambda b: (0, 0)),
        pl.BlockSpec(p["w2_mm"].shape, lambda b: (0, 0, 0)),
        pl.BlockSpec(p["w3_mm"].shape, lambda b: (0, 0)),
    ]
    if p["downsample"]:
        args.append(p["wd_mm"])
        in_specs.append(pl.BlockSpec(p["wd_mm"].shape, lambda b: (0, 0)))
    args += [p["bn12"], p["bn3d"]]
    in_specs += [pl.BlockSpec(p["bn12"].shape, lambda b: (0, 0)),
                 pl.BlockSpec(p["bn3d"].shape, lambda b: (0, 0))]

    kernel = functools.partial(_bottleneck_kernel, stride=s, Hq=Hq, Wq=Wq,
                               OH=OH, downsample=p["downsample"])

    flops = 2 * B * (nrows * cin * cm_p + 9 * M2 * cm_p * cm_p
                     + M2 * cm_p * ce_p
                     + (M2 * cin * ce_p if p["downsample"] else 0))
    weight_bytes = sum(int(np.prod(a.shape)) * 2 for a in args[2:-2])
    bytes_accessed = int(B * nrows * cin * 2 + nrows * 4 + weight_bytes
                         + (4 * cm_p + 4 * ce_p) * 4 + B * M2 * ce_p * 4)

    out = pl.pallas_call(
        kernel,
        out_shape=jax.ShapeDtypeStruct((B, M2, ce_p), jnp.float32),
        grid=(B,),
        in_specs=in_specs,
        out_specs=pl.BlockSpec((1, M2, ce_p), lambda b: (b, 0, 0)),
        scratch_shapes=[pltpu.VMEM((nrows, cm_p), jnp.bfloat16),   # h1 (phase)
                        pltpu.VMEM((M2, cm_p), jnp.float32)],      # conv2 acc
        compiler_params=pltpu.CompilerParams(
            dimension_semantics=("parallel",)),
        cost_estimate=pl.CostEstimate(flops=flops, transcendentals=0,
                                      bytes_accessed=bytes_accessed),
    )(*args)

    # Drop the padded columns / lane-padded channels while converting back to
    # NCHW (fuses into the single unavoidable output-layout pass).
    y = out.reshape(B, OH, Wq, ce_p)[:, :, :OW, :out_exp]
    return jnp.transpose(y, (0, 3, 1, 2))


def bottleneck_reference(x_nchw, p):
    r, stride = p["ref"], p["stride"]

    def conv(x, w, s, pad):
        return lax.conv_general_dilated(
            x, w.astype(jnp.float32), (s, s), [(pad, pad), (pad, pad)],
            dimension_numbers=("NCHW", "HWIO", "NCHW"),
            precision=lax.Precision.HIGHEST)

    def bn(x, bnp):
        sc, bi = fold_bn(*bnp)
        return x * sc[None, :, None, None] + bi[None, :, None, None]

    i = x_nchw
    h = jax.nn.relu(bn(conv(x_nchw, r["w1"], 1, 0), r["bn1"]))
    h = jax.nn.relu(bn(conv(h, r["w2"], stride, 1), r["bn2"]))
    h = bn(conv(h, r["w3"], 1, 0), r["bn3"])
    if p["downsample"]:
        i = bn(conv(i, r["wd"], stride, 0), r["bnd"])
    return jax.nn.relu(h + i)


# ---------------------------------------------------------------------------
if __name__ == "__main__":
    # Bottleneck(in_channels=16, out_channels=8, stride=2, downsample=True)
    in_ch, out_ch, stride, downsample = 16, 8, 2, True
    B, H, W = 2, 16, 16

    key = jax.random.PRNGKey(0)
    k_p, k_x = jax.random.split(key)
    params = build_bottleneck_params(k_p, in_ch, out_ch, stride, downsample)
    x = jax.random.normal(k_x, (B, in_ch, H, W), jnp.float32)

    fwd = jax.jit(lambda xx: bottleneck_forward(xx, params))
    out = fwd(x)
    jax.block_until_ready(out)

    assert out.shape == (B, 4 * out_ch, H // stride, W // stride), out.shape

    ref = bottleneck_reference(x, params)
    err = float(jnp.max(jnp.abs(out - ref)))
    assert err < 0.2, f"max abs error vs reference: {err}"
    print("KERNEL_OK")
</pallas_src>

<mosaic_0001>
module attributes {stable_mosaic.version = 11 : i64} {
  func.func @_bottleneck_kernel(%arg0: i32, %arg1: memref<1x328x16xbf16, #tpu.memory_space<vmem>>, %arg2: memref<328x1xf32, #tpu.memory_space<vmem>>, %arg3: memref<16x128xbf16, #tpu.memory_space<vmem>>, %arg4: memref<9x128x128xbf16, #tpu.memory_space<vmem>>, %arg5: memref<128x128xbf16, #tpu.memory_space<vmem>>, %arg6: memref<16x128xbf16, #tpu.memory_space<vmem>>, %arg7: memref<4x128xf32, #tpu.memory_space<vmem>>, %arg8: memref<4x128xf32, #tpu.memory_space<vmem>>, %arg9: memref<1x72x128xf32, #tpu.memory_space<vmem>>, %arg10: memref<328x128xbf16, #tpu.memory_space<vmem>>, %arg11: memref<72x128xf32, #tpu.memory_space<vmem>>) attributes {dimension_semantics = [#tpu.dimension_semantics<parallel>], iteration_bounds = array<i64: 2>, scalar_prefetch = 0 : i64, scratch_operands = 2 : i64, tpu.core_type = #tpu.core_type<tc>, window_params = [{transform_indices = @transform_0, window_bounds = array<i64: 1, 328, 16>}, {pipeline_mode = #tpu.pipeline_mode<synchronous>, transform_indices = @transform_1, window_bounds = array<i64: 328, 1>}, {pipeline_mode = #tpu.pipeline_mode<synchronous>, transform_indices = @transform_2, window_bounds = array<i64: 16, 128>}, {pipeline_mode = #tpu.pipeline_mode<synchronous>, transform_indices = @transform_3, window_bounds = array<i64: 9, 128, 128>}, {pipeline_mode = #tpu.pipeline_mode<synchronous>, transform_indices = @transform_4, window_bounds = array<i64: 128, 128>}, {pipeline_mode = #tpu.pipeline_mode<synchronous>, transform_indices = @transform_5, window_bounds = array<i64: 16, 128>}, {pipeline_mode = #tpu.pipeline_mode<synchronous>, transform_indices = @transform_6, window_bounds = array<i64: 4, 128>}, {pipeline_mode = #tpu.pipeline_mode<synchronous>, transform_indices = @transform_7, window_bounds = array<i64: 4, 128>}, {transform_indices = @transform_8, window_bounds = array<i64: 1, 72, 128>}]} {
    %c0 = arith.constant 0 : index
    %c0_0 = arith.constant 0 : index
    %c0_1 = arith.constant 0 : index
    %0 = vector.load %arg1[%c0, %c0_0, %c0_1] : memref<1x328x16xbf16, #tpu.memory_space<vmem>>, vector<1x328x16xbf16>
    %1 = vector.shape_cast %0 : vector<1x328x16xbf16> to vector<328x16xbf16>
    %c0_2 = arith.constant 0 : index
    %c0_3 = arith.constant 0 : index
    %2 = vector.load %arg3[%c0_2, %c0_3] : memref<16x128xbf16, #tpu.memory_space<vmem>>, vector<16x128xbf16>
    %cst = arith.constant dense<0.000000e+00> : vector<328x128xf32>
    %3 = tpu.matmul %1, %2, %cst {dimension_numbers = #tpu.dot_dimension_numbers<[1], [0], [0], [1], [0, 0, 1, 1], [], []>} : vector<328x16xbf16>, vector<16x128xbf16>, vector<328x128xf32> -> vector<328x128xf32>
    %c0_4 = arith.constant 0 : index
    %c0_5 = arith.constant 0 : index
    %4 = vector.load %arg7[%c0_4, %c0_5] : memref<4x128xf32, #tpu.memory_space<vmem>>, vector<1x128xf32>
    %5 = vector.broadcast %4 : vector<1x128xf32> to vector<328x128xf32>
    %6 = arith.mulf %3, %5 : vector<328x128xf32>
    %c1 = arith.constant 1 : index
    %c0_6 = arith.constant 0 : index
    %7 = vector.load %arg7[%c1, %c0_6] : memref<4x128xf32, #tpu.memory_space<vmem>>, vector<1x128xf32>
    %8 = vector.broadcast %7 : vector<1x128xf32> to vector<328x128xf32>
    %9 = arith.addf %6, %8 : vector<328x128xf32>
    %cst_7 = arith.constant 0.000000e+00 : f32
    %10 = vector.broadcast %cst_7 : f32 to vector<328x128xf32>
    %11 = arith.maximumf %9, %10 : vector<328x128xf32>
    %c0_8 = arith.constant 0 : index
    %c0_9 = arith.constant 0 : index
    %12 = vector.load %arg2[%c0_8, %c0_9] : memref<328x1xf32, #tpu.memory_space<vmem>>, vector<328x1xf32>
    %13 = vector.broadcast %12 : vector<328x1xf32> to vector<328x128xf32>
    %14 = arith.mulf %11, %13 : vector<328x128xf32>
    %15 = arith.truncf %14 : vector<328x128xf32> to vector<328x128xbf16>
    %c0_10 = arith.constant 0 : index
    %c0_11 = arith.constant 0 : index
    %16 = vector.load %arg10[%c0_10, %c0_11] : memref<328x128xbf16, #tpu.memory_space<vmem>>, vector<328x128xbf16>
    tpu.vector_store %arg10[%c0_10, %c0_11], %15 {strides = array<i32>} : memref<328x128xbf16, #tpu.memory_space<vmem>>, vector<328x128xbf16>,
    %c0_12 = arith.constant 0 : index
    %c0_13 = arith.constant 0 : index
    %17 = vector.load %arg10[%c0_12, %c0_13] : memref<328x128xbf16, #tpu.memory_space<vmem>>, vector<72x128xbf16>
    %c0_14 = arith.constant 0 : index
    %c0_15 = arith.constant 0 : index
    %c0_16 = arith.constant 0 : index
    %18 = vector.load %arg4[%c0_14, %c0_15, %c0_16] : memref<9x128x128xbf16, #tpu.memory_space<vmem>>, vector<1x128x128xbf16>
    %19 = vector.shape_cast %18 : vector<1x128x128xbf16> to vector<128x128xbf16>
    %cst_17 = arith.constant dense<0.000000e+00> : vector<72x128xf32>
    %20 = tpu.matmul %17, %19, %cst_17 {dimension_numbers = #tpu.dot_dimension_numbers<[1], [0], [0], [1], [0, 0, 1, 1], [], []>} : vector<72x128xbf16>, vector<128x128xbf16>, vector<72x128xf32> -> vector<72x128xf32>
    %c0_18 = arith.constant 0 : index
    %c0_19 = arith.constant 0 : index
    %21 = vector.load %arg11[%c0_18, %c0_19] : memref<72x128xf32, #tpu.memory_space<vmem>>, vector<72x128xf32>
    tpu.vector_store %arg11[%c0_18, %c0_19], %20 {strides = array<i32>} : memref<72x128xf32, #tpu.memory_space<vmem>>, vector<72x128xf32>,
    %c81 = arith.constant 81 : index
    %c0_20 = arith.constant 0 : index
    %22 = vector.load %arg10[%c81, %c0_20] : memref<328x128xbf16, #tpu.memory_space<vmem>>, vector<72x128xbf16>
    %c1_21 = arith.constant 1 : index
    %c0_22 = arith.constant 0 : index
    %c0_23 = arith.constant 0 : index
    %23 = vector.load %arg4[%c1_21, %c0_22, %c0_23] : memref<9x128x128xbf16, #tpu.memory_space<vmem>>, vector<1x128x128xbf16>
    %24 = vector.shape_cast %23 : vector<1x128x128xbf16> to vector<128x128xbf16>
    %cst_24 = arith.constant dense<0.000000e+00> : vector<72x128xf32>
    %25 = tpu.matmul %22, %24, %cst_24 {dimension_numbers = #tpu.dot_dimension_numbers<[1], [0], [0], [1], [0, 0, 1, 1], [], []>} : vector<72x128xbf16>, vector<128x128xbf16>, vector<72x128xf32> -> vector<72x128xf32>
    %c0_25 = arith.constant 0 : index
    %c0_26 = arith.constant 0 : index
    %26 = vector.load %arg11[%c0_25, %c0_26] : memref<72x128xf32, #tpu.memory_space<vmem>>, vector<72x128xf32>
    %27 = arith.addf %26, %25 : vector<72x128xf32>
    %c0_27 = arith.constant 0 : index
    %c0_28 = arith.constant 0 : index
    %28 = vector.load %arg11[%c0_27, %c0_28] : memref<72x128xf32, #tpu.memory_space<vmem>>, vector<72x128xf32>
    tpu.vector_store %arg11[%c0_27, %c0_28], %27 {strides = array<i32>} : memref<72x128xf32, #tpu.memory_space<vmem>>, vector<72x128xf32>,
    %c1_29 = arith.constant 1 : index
    %c0_30 = arith.constant 0 : index
    %29 = vector.load %arg10[%c1_29, %c0_30] : memref<328x128xbf16, #tpu.memory_space<vmem>>, vector<72x128xbf16>
    %c2 = arith.constant 2 : index
    %c0_31 = arith.constant 0 : index
    %c0_32 = arith.constant 0 : index
    %30 = vector.load %arg4[%c2, %c0_31, %c0_32] : memref<9x128x128xbf16, #tpu.memory_space<vmem>>, vector<1x128x128xbf16>
    %31 = vector.shape_cast %30 : vector<1x128x128xbf16> to vector<128x128xbf16>
    %cst_33 = arith.constant dense<0.000000e+00> : vector<72x128xf32>
    %32 = tpu.matmul %29, %31, %cst_33 {dimension_numbers = #tpu.dot_dimension_numbers<[1], [0], [0], [1], [0, 0, 1, 1], [], []>} : vector<72x128xbf16>, vector<128x128xbf16>, vector<72x128xf32> -> vector<72x128xf32>
    %c0_34 = arith.constant 0 : index
    %c0_35 = arith.constant 0 : index
    %33 = vector.load %arg11[%c0_34, %c0_35] : memref<72x128xf32, #tpu.memory_space<vmem>>, vector<72x128xf32>
    %34 = arith.addf %33, %32 : vector<72x128xf32>
    %c0_36 = arith.constant 0 : index
    %c0_37 = arith.constant 0 : index
    %35 = vector.load %arg11[%c0_36, %c0_37] : memref<72x128xf32, #tpu.memory_space<vmem>>, vector<72x128xf32>
    tpu.vector_store %arg11[%c0_36, %c0_37], %34 {strides = array<i32>} : memref<72x128xf32, #tpu.memory_space<vmem>>, vector<72x128xf32>,
    %c162 = arith.constant 162 : index
    %c0_38 = arith.constant 0 : index
    %36 = vector.load %arg10[%c162, %c0_38] : memref<328x128xbf16, #tpu.memory_space<vmem>>, vector<72x128xbf16>
    %c3 = arith.constant 3 : index
    %c0_39 = arith.constant 0 : index
    %c0_40 = arith.constant 0 : index
    %37 = vector.load %arg4[%c3, %c0_39, %c0_40] : memref<9x128x128xbf16, #tpu.memory_space<vmem>>, vector<1x128x128xbf16>
    %38 = vector.shape_cast %37 : vector<1x128x128xbf16> to vector<128x128xbf16>
    %cst_41 = arith.constant dense<0.000000e+00> : vector<72x128xf32>
    %39 = tpu.matmul %36, %38, %cst_41 {dimension_numbers = #tpu.dot_dimension_numbers<[1], [0], [0], [1], [0, 0, 1, 1], [], []>} : vector<72x128xbf16>, vector<128x128xbf16>, vector<72x128xf32> -> vector<72x128xf32>
    %c0_42 = arith.constant 0 : index
    %c0_43 = arith.constant 0 : index
    %40 = vector.load %arg11[%c0_42, %c0_43] : memref<72x128xf32, #tpu.memory_space<vmem>>, vector<72x128xf32>
    %41 = arith.addf %40, %39 : vector<72x128xf32>
    %c0_44 = arith.constant 0 : index
    %c0_45 = arith.constant 0 : index
    %42 = vector.load %arg11[%c0_44, %c0_45] : memref<72x128xf32, #tpu.memory_space<vmem>>, vector<72x128xf32>
    tpu.vector_store %arg11[%c0_44, %c0_45], %41 {strides = array<i32>} : memref<72x128xf32, #tpu.memory_space<vmem>>, vector<72x128xf32>,
    %c243 = arith.constant 243 : index
    %c0_46 = arith.constant 0 : index
    %43 = vector.load %arg10[%c243, %c0_46] : memref<328x128xbf16, #tpu.memory_space<vmem>>, vector<72x128xbf16>
    %c4 = arith.constant 4 : index
    %c0_47 = arith.constant 0 : index
    %c0_48 = arith.constant 0 : index
    %44 = vector.load %arg4[%c4, %c0_47, %c0_48] : memref<9x128x128xbf16, #tpu.memory_space<vmem>>, vector<1x128x128xbf16>
    %45 = vector.shape_cast %44 : vector<1x128x128xbf16> to vector<128x128xbf16>
    %cst_49 = arith.constant dense<0.000000e+00> : vector<72x128xf32>
    %46 = tpu.matmul %43, %45, %cst_49 {dimension_numbers = #tpu.dot_dimension_numbers<[1], [0], [0], [1], [0, 0, 1, 1], [], []>} : vector<72x128xbf16>, vector<128x128xbf16>, vector<72x128xf32> -> vector<72x128xf32>
    %c0_50 = arith.constant 0 : index
    %c0_51 = arith.constant 0 : index
    %47 = vector.load %arg11[%c0_50, %c0_51] : memref<72x128xf32, #tpu.memory_space<vmem>>, vector<72x128xf32>
    %48 = arith.addf %47, %46 : vector<72x128xf32>
    %c0_52 = arith.constant 0 : index
    %c0_53 = arith.constant 0 : index
    %49 = vector.load %arg11[%c0_52, %c0_53] : memref<72x128xf32, #tpu.memory_space<vmem>>, vector<72x128xf32>
    tpu.vector_store %arg11[%c0_52, %c0_53], %48 {strides = array<i32>} : memref<72x128xf32, #tpu.memory_space<vmem>>, vector<72x128xf32>,
    %c163 = arith.constant 163 : index
    %c0_54 = arith.constant 0 : index
    %50 = vector.load %arg10[%c163, %c0_54] : memref<328x128xbf16, #tpu.memory_space<vmem>>, vector<72x128xbf16>
    %c5 = arith.constant 5 : index
    %c0_55 = arith.constant 0 : index
    %c0_56 = arith.constant 0 : index
    %51 = vector.load %arg4[%c5, %c0_55, %c0_56] : memref<9x128x128xbf16, #tpu.memory_space<vmem>>, vector<1x128x128xbf16>
    %52 = vector.shape_cast %51 : vector<1x128x128xbf16> to vector<128x128xbf16>
    %cst_57 = arith.constant dense<0.000000e+00> : vector<72x128xf32>
    %53 = tpu.matmul %50, %52, %cst_57 {dimension_numbers = #tpu.dot_dimension_numbers<[1], [0], [0], [1], [0, 0, 1, 1], [], []>} : vector<72x128xbf16>, vector<128x128xbf16>, vector<72x128xf32> -> vector<72x128xf32>
    %c0_58 = arith.constant 0 : index
    %c0_59 = arith.constant 0 : index
    %54 = vector.load %arg11[%c0_58, %c0_59] : memref<72x128xf32, #tpu.memory_space<vmem>>, vector<72x128xf32>
    %55 = arith.addf %54, %53 : vector<72x128xf32>
    %c0_60 = arith.constant 0 : index
    %c0_61 = arith.constant 0 : index
    %56 = vector.load %arg11[%c0_60, %c0_61] : memref<72x128xf32, #tpu.memory_space<vmem>>, vector<72x128xf32>
    tpu.vector_store %arg11[%c0_60, %c0_61], %55 {strides = array<i32>} : memref<72x128xf32, #tpu.memory_space<vmem>>, vector<72x128xf32>,
    %c9 = arith.constant 9 : index
    %c0_62 = arith.constant 0 : index
    %57 = vector.load %arg10[%c9, %c0_62] : memref<328x128xbf16, #tpu.memory_space<vmem>>, vector<72x128xbf16>
    %c6 = arith.constant 6 : index
    %c0_63 = arith.constant 0 : index
    %c0_64 = arith.constant 0 : index
    %58 = vector.load %arg4[%c6, %c0_63, %c0_64] : memref<9x128x128xbf16, #tpu.memory_space<vmem>>, vector<1x128x128xbf16>
    %59 = vector.shape_cast %58 : vector<1x128x128xbf16> to vector<128x128xbf16>
    %cst_65 = arith.constant dense<0.000000e+00> : vector<72x128xf32>
    %60 = tpu.matmul %57, %59, %cst_65 {dimension_numbers = #tpu.dot_dimension_numbers<[1], [0], [0], [1], [0, 0, 1, 1], [], []>} : vector<72x128xbf16>, vector<128x128xbf16>, vector<72x128xf32> -> vector<72x128xf32>
    %c0_66 = arith.constant 0 : index
    %c0_67 = arith.constant 0 : index
    %61 = vector.load %arg11[%c0_66, %c0_67] : memref<72x128xf32, #tpu.memory_space<vmem>>, vector<72x128xf32>
    %62 = arith.addf %61, %60 : vector<72x128xf32>
    %c0_68 = arith.constant 0 : index
    %c0_69 = arith.constant 0 : index
    %63 = vector.load %arg11[%c0_68, %c0_69] : memref<72x128xf32, #tpu.memory_space<vmem>>, vector<72x128xf32>
    tpu.vector_store %arg11[%c0_68, %c0_69], %62 {strides = array<i32>} : memref<72x128xf32, #tpu.memory_space<vmem>>, vector<72x128xf32>,
    %c90 = arith.constant 90 : index
    %c0_70 = arith.constant 0 : index
    %64 = vector.load %arg10[%c90, %c0_70] : memref<328x128xbf16, #tpu.memory_space<vmem>>, vector<72x128xbf16>
    %c7 = arith.constant 7 : index
    %c0_71 = arith.constant 0 : index
    %c0_72 = arith.constant 0 : index
    %65 = vector.load %arg4[%c7, %c0_71, %c0_72] : memref<9x128x128xbf16, #tpu.memory_space<vmem>>, vector<1x128x128xbf16>
    %66 = vector.shape_cast %65 : vector<1x128x128xbf16> to vector<128x128xbf16>
    %cst_73 = arith.constant dense<0.000000e+00> : vector<72x128xf32>
    %67 = tpu.matmul %64, %66, %cst_73 {dimension_numbers = #tpu.dot_dimension_numbers<[1], [0], [0], [1], [0, 0, 1, 1], [], []>} : vector<72x128xbf16>, vector<128x128xbf16>, vector<72x128xf32> -> vector<72x128xf32>
    %c0_74 = arith.constant 0 : index
    %c0_75 = arith.constant 0 : index
    %68 = vector.load %arg11[%c0_74, %c0_75] : memref<72x128xf32, #tpu.memory_space<vmem>>, vector<72x128xf32>
    %69 = arith.addf %68, %67 : vector<72x128xf32>
    %c0_76 = arith.constant 0 : index
    %c0_77 = arith.constant 0 : index
    %70 = vector.load %arg11[%c0_76, %c0_77] : memref<72x128xf32, #tpu.memory_space<vmem>>, vector<72x128xf32>
    tpu.vector_store %arg11[%c0_76, %c0_77], %69 {strides = array<i32>} : memref<72x128xf32, #tpu.memory_space<vmem>>, vector<72x128xf32>,
    %c10 = arith.constant 10 : index
    %c0_78 = arith.constant 0 : index
    %71 = vector.load %arg10[%c10, %c0_78] : memref<328x128xbf16, #tpu.memory_space<vmem>>, vector<72x128xbf16>
    %c8 = arith.constant 8 : index
    %c0_79 = arith.constant 0 : index
    %c0_80 = arith.constant 0 : index
    %72 = vector.load %arg4[%c8, %c0_79, %c0_80] : memref<9x128x128xbf16, #tpu.memory_space<vmem>>, vector<1x128x128xbf16>
    %73 = vector.shape_cast %72 : vector<1x128x128xbf16> to vector<128x128xbf16>
    %cst_81 = arith.constant dense<0.000000e+00> : vector<72x128xf32>
    %74 = tpu.matmul %71, %73, %cst_81 {dimension_numbers = #tpu.dot_dimension_numbers<[1], [0], [0], [1], [0, 0, 1, 1], [], []>} : vector<72x128xbf16>, vector<128x128xbf16>, vector<72x128xf32> -> vector<72x128xf32>
    %c0_82 = arith.constant 0 : index
    %c0_83 = arith.constant 0 : index
    %75 = vector.load %arg11[%c0_82, %c0_83] : memref<72x128xf32, #tpu.memory_space<vmem>>, vector<72x128xf32>
    %76 = arith.addf %75, %74 : vector<72x128xf32>
    %c0_84 = arith.constant 0 : index
    %c0_85 = arith.constant 0 : index
    %77 = vector.load %arg11[%c0_84, %c0_85] : memref<72x128xf32, #tpu.memory_space<vmem>>, vector<72x128xf32>
    tpu.vector_store %arg11[%c0_84, %c0_85], %76 {strides = array<i32>} : memref<72x128xf32, #tpu.memory_space<vmem>>, vector<72x128xf32>,
    %c0_86 = arith.constant 0 : index
    %c0_87 = arith.constant 0 : index
    %78 = vector.load %arg11[%c0_86, %c0_87] : memref<72x128xf32, #tpu.memory_space<vmem>>, vector<72x128xf32>
    %c2_88 = arith.constant 2 : index
    %c0_89 = arith.constant 0 : index
    %79 = vector.load %arg7[%c2_88, %c0_89] : memref<4x128xf32, #tpu.memory_space<vmem>>, vector<1x128xf32>
    %80 = vector.broadcast %79 : vector<1x128xf32> to vector<72x128xf32>
    %81 = arith.mulf %78, %80 : vector<72x128xf32>
    %c3_90 = arith.constant 3 : index
    %c0_91 = arith.constant 0 : index
    %82 = vector.load %arg7[%c3_90, %c0_91] : memref<4x128xf32, #tpu.memory_space<vmem>>, vector<1x128xf32>
    %83 = vector.broadcast %82 : vector<1x128xf32> to vector<72x128xf32>
    %84 = arith.addf %81, %83 : vector<72x128xf32>
    %cst_92 = arith.constant 0.000000e+00 : f32
    %85 = vector.broadcast %cst_92 : f32 to vector<72x128xf32>
    %86 = arith.maximumf %84, %85 : vector<72x128xf32>
    %87 = arith.truncf %86 : vector<72x128xf32> to vector<72x128xbf16>
    %c0_93 = arith.constant 0 : index
    %c0_94 = arith.constant 0 : index
    %88 = vector.load %arg5[%c0_93, %c0_94] : memref<128x128xbf16, #tpu.memory_space<vmem>>, vector<128x128xbf16>
    %cst_95 = arith.constant dense<0.000000e+00> : vector<72x128xf32>
    %89 = tpu.matmul %87, %88, %cst_95 {dimension_numbers = #tpu.dot_dimension_numbers<[1], [0], [0], [1], [0, 0, 1, 1], [], []>} : vector<72x128xbf16>, vector<128x128xbf16>, vector<72x128xf32> -> vector<72x128xf32>
    %c0_96 = arith.constant 0 : index
    %c0_97 = arith.constant 0 : index
    %90 = vector.load %arg8[%c0_96, %c0_97] : memref<4x128xf32, #tpu.memory_space<vmem>>, vector<1x128xf32>
    %91 = vector.broadcast %90 : vector<1x128xf32> to vector<72x128xf32>
    %92 = arith.mulf %89, %91 : vector<72x128xf32>
    %c1_98 = arith.constant 1 : index
    %c0_99 = arith.constant 0 : index
    %93 = vector.load %arg8[%c1_98, %c0_99] : memref<4x128xf32, #tpu.memory_space<vmem>>, vector<1x128xf32>
    %94 = vector.broadcast %93 : vector<1x128xf32> to vector<72x128xf32>
    %95 = arith.addf %92, %94 : vector<72x128xf32>
    %c0_100 = arith.constant 0 : index
    %c243_101 = arith.constant 243 : index
    %c0_102 = arith.constant 0 : index
    %96 = vector.load %arg1[%c0_100, %c243_101, %c0_102] : memref<1x328x16xbf16, #tpu.memory_space<vmem>>, vector<1x72x16xbf16>
    %97 = vector.shape_cast %96 : vector<1x72x16xbf16> to vector<72x16xbf16>
    %c0_103 = arith.constant 0 : index
    %c0_104 = arith.constant 0 : index
    %98 = vector.load %arg6[%c0_103, %c0_104] : memref<16x128xbf16, #tpu.memory_space<vmem>>, vector<16x128xbf16>
    %cst_105 = arith.constant dense<0.000000e+00> : vector<72x128xf32>
    %99 = tpu.matmul %97, %98, %cst_105 {dimension_numbers = #tpu.dot_dimension_numbers<[1], [0], [0], [1], [0, 0, 1, 1], [], []>} : vector<72x16xbf16>, vector<16x128xbf16>, vector<72x128xf32> -> vector<72x128xf32>
    %c2_106 = arith.constant 2 : index
    %c0_107 = arith.constant 0 : index
    %100 = vector.load %arg8[%c2_106, %c0_107] : memref<4x128xf32, #tpu.memory_space<vmem>>, vector<1x128xf32>
    %101 = vector.broadcast %100 : vector<1x128xf32> to vector<72x128xf32>
    %102 = arith.mulf %99, %101 : vector<72x128xf32>
    %c3_108 = arith.constant 3 : index
    %c0_109 = arith.constant 0 : index
    %103 = vector.load %arg8[%c3_108, %c0_109] : memref<4x128xf32, #tpu.memory_space<vmem>>, vector<1x128xf32>
    %104 = vector.broadcast %103 : vector<1x128xf32> to vector<72x128xf32>
    %105 = arith.addf %102, %104 : vector<72x128xf32>
    %106 = arith.addf %95, %105 : vector<72x128xf32>
    %cst_110 = arith.constant 0.000000e+00 : f32
    %107 = vector.broadcast %cst_110 : f32 to vector<72x128xf32>
    %108 = arith.maximumf %106, %107 : vector<72x128xf32>
    %c0_111 = arith.constant 0 : index
    %c0_112 = arith.constant 0 : index
    %c0_113 = arith.constant 0 : index
    %109 = vector.load %arg9[%c0_111, %c0_112, %c0_113] : memref<1x72x128xf32, #tpu.memory_space<vmem>>, vector<1x72x128xf32>
    %110 = vector.shape_cast %109 : vector<1x72x128xf32> to vector<72x128xf32>
    %111 = vector.shape_cast %108 : vector<72x128xf32> to vector<1x72x128xf32>
    tpu.vector_store %arg9[%c0_111, %c0_112, %c0_113], %111 {strides = array<i32>} : memref<1x72x128xf32, #tpu.memory_space<vmem>>, vector<1x72x128xf32>,
    return
  }
  func.func @transform_0(%arg0: i32) -> (i32, i32, i32) {
    %c0_i32 = arith.constant 0 : i32
    %c0_i32_0 = arith.constant 0 : i32
    %c0_i32_1 = arith.constant 0 : i32
    return %arg0, %c0_i32, %c0_i32_0 : i32, i32, i32
  }
  func.func @transform_1(%arg0: i32) -> (i32, i32) {
    %c0_i32 = arith.constant 0 : i32
    %c0_i32_0 = arith.constant 0 : i32
    %c0_i32_1 = arith.constant 0 : i32
    return %c0_i32, %c0_i32_0 : i32, i32
  }
  func.func @transform_2(%arg0: i32) -> (i32, i32) {
    %c0_i32 = arith.constant 0 : i32
    %c0_i32_0 = arith.constant 0 : i32
    %c0_i32_1 = arith.constant 0 : i32
    return %c0_i32, %c0_i32_0 : i32, i32
  }
  func.func @transform_3(%arg0: i32) -> (i32, i32, i32) {
    %c0_i32 = arith.constant 0 : i32
    %c0_i32_0 = arith.constant 0 : i32
    %c0_i32_1 = arith.constant 0 : i32
    %c0_i32_2 = arith.constant 0 : i32
    return %c0_i32, %c0_i32_0, %c0_i32_1 : i32, i32, i32
  }
  func.func @transform_4(%arg0: i32) -> (i32, i32) {
    %c0_i32 = arith.constant 0 : i32
    %c0_i32_0 = arith.constant 0 : i32
    %c0_i32_1 = arith.constant 0 : i32
    return %c0_i32, %c0_i32_0 : i32, i32
  }
  func.func @transform_5(%arg0: i32) -> (i32, i32) {
    %c0_i32 = arith.constant 0 : i32
    %c0_i32_0 = arith.constant 0 : i32
    %c0_i32_1 = arith.constant 0 : i32
    return %c0_i32, %c0_i32_0 : i32, i32
  }
  func.func @transform_6(%arg0: i32) -> (i32, i32) {
    %c0_i32 = arith.constant 0 : i32
    %c0_i32_0 = arith.constant 0 : i32
    %c0_i32_1 = arith.constant 0 : i32
    return %c0_i32, %c0_i32_0 : i32, i32
  }
  func.func @transform_7(%arg0: i32) -> (i32, i32) {
    %c0_i32 = arith.constant 0 : i32
    %c0_i32_0 = arith.constant 0 : i32
    %c0_i32_1 = arith.constant 0 : i32
    return %c0_i32, %c0_i32_0 : i32, i32
  }
  func.func @transform_8(%arg0: i32) -> (i32, i32, i32) {
    %c0_i32 = arith.constant 0 : i32
    %c0_i32_0 = arith.constant 0 : i32
    %c0_i32_1 = arith.constant 0 : i32
    return %arg0, %c0_i32, %c0_i32_0 : i32, i32, i32
  }
}

</mosaic_0001>

<bundles_post_ra>
// kernel: _lambda_.1
= control target key start
LH: loop header
LB: loop body
LE: loop exit
PB: predicated region body
PF: predicated region fallthrough
CT: control target
= control target key end

     0   :  { %s4357_s27 = smov 0   ;;  %s5295_s0 = inlined_call_operand.vmem [shape: bf16[2,328,16], index: 0, kind: input, shape index: {}]   ;;  %s5296_s1 = inlined_call_operand.vmem [shape: f32[328,1], index: 1, kind: input, shape index: {}]   ;;  %s5297_s2 = inlined_call_operand.vmem [shape: bf16[16,128], index: 2, kind: input, shape index: {}]   ;;  %s5298_s3 = inlined_call_operand.vmem [shape: bf16[9,128,128], index: 3, kind: input, shape index: {}]   ;;  %s5299_s4 = inlined_call_operand.vmem [shape: bf16[128,128], index: 4, kind: input, shape index: {}]   ;;  %s5300_s5 = inlined_call_operand.vmem [shape: bf16[16,128], index: 5, kind: input, shape index: {}]   ;;  %s5301_s6 = inlined_call_operand.vmem [shape: f32[4,128], index: 6, kind: input, shape index: {}]   ;;  %s5302_s7 = inlined_call_operand.vmem [shape: f32[4,128], index: 7, kind: input, shape index: {}]   ;;  %s5303_s8 = inlined_call_operand.vmem [shape: f32[2,72,128], index: 8, kind: output, shape index: {}]  }
   0x1 LB: > { %s3233_s28 = sadd.s32 4294967295, %s4309_s27   ;;  %p3237_p0 = scmp.ge.s32.totalorder %s4309_s27, 1  ;;  %s4309_s27 = sphi %s4357_s27, %s18_s27  }
   0x2   : > { %p262_p1 = scmp.lt.s32.totalorder %s4309_s27, 3 }
   0x4   : > { %p263_p2 = pnand %p3237_p0, %p262_p1 }
   0x5   : > { %p296_p3 = scmp.lt.s32.totalorder (!%p263_p2), %s3233_s28, 1 }
   0x6   : > { %266 = sbr.rel (%p263_p2) target bundleno = 888 (0x378), region = 52 }
   0xb   : > { %v4020_v0 = vld [vmem:[%s5297_s2] sm:$0xff]  ;;  %v769_v2 = vld [vmem:[%s5296_s1 + $0x30] sm:$0xff]  ;;  %v4311_v3 = vmov 0   ;;  %s5305_s28 = smov (!%p296_p3, %s3233_s28), 1  ;;  %vm459_vm0 = vcmask 130048   ;;  %v768_v6 = vld [vmem:[%s5296_s1 + $0x28] sm:$0xff] }
   0xc   : > { %v767_v1 = vld [vmem:[%s5296_s1 + $0x20] sm:$0xff]  ;;  %4290 = vset.pattern.permute.xlu0 %v4311_v3  ;;  %4291 = vset.pattern.permute.xlu1 %v4311_v3  ;;  %s4279_s15 = smul.u32 164, %s5305_s28  ;;  %v770_v7 = vld [vmem:[%s5296_s1 + $0x38] sm:$0xff]  ;;  %v772_v8 = vld [vmem:[%s5296_s1 + $0x48] sm:$0xff]  ;;  %vm1327_vm1 = vsmask.f32 7424 }
   0xd   : > { %530 = vmatpush.bf16.msra.mxu0 %v4020_v0  ;;  %826 = vperm.xlu0 %4290, %v767_v1   ;;  %v771_v4 = vld [vmem:[%s5296_s1 + $0x40] sm:$0xff]  ;;  %v773_v9 = vld [vmem:[%s5296_s1 + $0x50] sm:$0xff]  ;;  %v774_v10 = vld [vmem:[%s5296_s1 + $0x58] sm:$0xff]  ;;  %vm1736_vm2 = vcmask 1046528   ;;  %vm1911_vm3 = vsmask.f32 6400 }
   0xe   : > { %836 = vperm.xlu1 %4291, %v769_v2   ;;  %4292 = vset.pattern.permute.xlu2 %v4311_v3  ;;  %s4383_s18 = scalar_lea.vmem %s5295_s0, %s4279_s15  ;;  %v763_v11 = vld [vmem:[%s5296_s1] sm:$0xff]  ;;  %v764_v13 = vld [vmem:[%s5296_s1 + $0x8] sm:$0xff]  ;;  %v765_v15 = vld [vmem:[%s5296_s1 + $0x10] sm:$0xff]  ;;  %s4280_s9 = smul.u32 72, %s5305_s28 }
   0xf   : > { %846 = vperm.xlu2 %4292, %v771_v4   ;;  %v4000_v5 = vld [vmem:[%s4383_s18] sm:$0xff]  ;;  %v4001_v12 = vld [vmem:[%s4383_s18 + $0x8] sm:$0xff]  ;;  %v766_v16 = vld [vmem:[%s5296_s1 + $0x18] sm:$0xff] }
  0x10   : > { %3324 = vmatmul.msk.bf16.vlgmr.msra.gmra.mxu0 %vm459_vm0, %v4000_v5  ;;  %v775_v14 = vld [vmem:[%s5296_s1 + $0x60] sm:$0xff]  ;;  %v4002_v17 = vld [vmem:[%s4383_s18 + $0x10] sm:$0xff]  ;;  %v4003_v18 = vld [vmem:[%s4383_s18 + $0x18] sm:$0xff]  ;;  %s5252_s12 = scalar_lea.vmem %s5303_s8, %s4280_s9 }
  0x11   : > { %v778_v19 = vld [vmem:[%s5296_s1 + $0x78] sm:$0xff]  ;;  %v4004_v20 = vld [vmem:[%s4383_s18 + $0x20] sm:$0xff]  ;;  %v781_v21 = vld [vmem:[%s5296_s1 + $0x90] sm:$0xff] }
  0x12   : > { %v779_v22 = vld [vmem:[%s5296_s1 + $0x80] sm:$0xff]  ;;  %v794_v23 = vld [vmem:[%s5296_s1 + $0xf8] sm:$0xff]  ;;  %v4005_v24 = vld [vmem:[%s4383_s18 + $0x28] sm:$0xff] }
  0x13   : > { %v782_v25 = vld [vmem:[%s5296_s1 + $0x98] sm:$0xff]  ;;  %v783_v26 = vld [vmem:[%s5296_s1 + $0xa0] sm:$0xff]  ;;  %v4006_v30 = vld [vmem:[%s4383_s18 + $0x30] sm:$0xff] }
  0x14   : > { %v4032_v27 = vld [vmem:[%s5298_s3 + $0x38] sm:$0xff]  ;;  %v795_v28 = vld [vmem:[%s5296_s1 + $0x100] sm:$0xff]  ;;  %v4031_v31 = vld [vmem:[%s5298_s3 + $0x30] sm:$0xff] }
  0x15   : > { %831 = vperm.xlu0 %4290, %v768_v6   ;;  %1233 = vmatpush.bf16.msra.mxu1 %v4032_v27  ;;  %v786_v29 = vld [vmem:[%s5296_s1 + $0xb8] sm:$0xff]  ;;  %v784_v32 = vld [vmem:[%s5296_s1 + $0xa8] sm:$0xff]  ;;  %v787_v33 = vld [vmem:[%s5296_s1 + $0xc0] sm:$0xff] }
  0x16   : > { %841 = vperm.xlu1 %4291, %v770_v7   ;;  %4270 = vmatpush.bf16.msra.mxu3 %v4032_v27  ;;  %v4030_v34 = vld [vmem:[%s5298_s3 + $0x28] sm:$0xff]  ;;  %v4029_v36 = vld [vmem:[%s5298_s3 + $0x20] sm:$0xff]  ;;  %v797_v37 = vld [vmem:[%s5296_s1 + $0x110] sm:$0xff] }
  0x17   : > { %851 = vperm.xlu2 %4292, %v772_v8   ;;  %v776_v35 = vld [vmem:[%s5296_s1 + $0x68] sm:$0xff]  ;;  %v4028_v39 = vld [vmem:[%s5298_s3 + $0x18] sm:$0xff]  ;;  %v777_v41 = vld [vmem:[%s5296_s1 + $0x70] sm:$0xff] }
  0x18   : > { %v800_v38 = vld [vmem:[%s5296_s1 + $0x128] sm:$0xff]  ;;  %v4007_v42 = vld [vmem:[%s4383_s18 + $0x38] sm:$0xff]  ;;  %v4027_v43 = vld [vmem:[%s5298_s3 + $0x10] sm:$0xff] }
  0x19   : > { %1234 = vmatpush.bf16.msra.mxu1 %v4031_v31  ;;  %v788_v44 = vld [vmem:[%s5296_s1 + $0xc8] sm:$0xff]  ;;  %v801_v45 = vld [vmem:[%s5296_s1 + $0x130] sm:$0xff]  ;;  %v4025_v49 = vld [vmem:[%s5298_s3] sm:$0xff] }
  0x1a   : > { %4271 = vmatpush.bf16.msra.mxu3 %v4031_v31  ;;  %v4026_v46 = vld [vmem:[%s5298_s3 + $0x8] sm:$0xff]  ;;  %v789_v52 = vld [vmem:[%s5296_s1 + $0xd0] sm:$0xff]  ;;  %v4528_v56 = vld [vmem:[%s5301_s6] ss:$0 sm:$0xff] }
  0x1b   : > { %v780_v48 = vld [vmem:[%s5296_s1 + $0x88] sm:$0xff]  ;;  %v793_v55 = vld [vmem:[%s5296_s1 + $0xf0] sm:$0xff]  ;;  %v4008_v57 = vld [vmem:[%s4383_s18 + $0x40] sm:$0xff] }
  0x1c   : > { %v792_v53 = vld [vmem:[%s5296_s1 + $0xe8] sm:$0xff]  ;;  %v4539_v62 = vld [vmem:[%s5301_s6 + $0x1] ss:$0 sm:$0xff]  ;;  %v802_v63 = vld [vmem:[%s5296_s1 + $0x138] sm:$0xff] }
  0x1d   : > { %856 = vperm.xlu0 %4290, %v773_v9   ;;  %1235 = vmatpush.bf16.msra.mxu1 %v4030_v34  ;;  %v796_v0 = vld [vmem:[%s5296_s1 + $0x108] sm:$0xff] }
  0x1e   : > { %861 = vperm.xlu1 %4291, %v774_v10   ;;  %4272 = vmatpush.bf16.msra.mxu3 %v4030_v34  ;;  %v803_v10 = vld [vmem:[%s5296_s1 + $0x140] sm:$0xff] }
  0x1f   : > { %806 = vperm.xlu2 %4292, %v763_v11   ;;  %v785_v11 = vld [vmem:[%s5296_s1 + $0xb0] sm:$0xff] }
  0x20   : > { %3325 = vmatmul.msk.bf16.gmra.mxu0 %vm459_vm0, %v4001_v12 }
  0x21   : > { %1236 = vmatpush.bf16.msra.mxu1 %v4029_v36 }
  0x22   : > { %4273 = vmatpush.bf16.msra.mxu3 %v4029_v36  ;;  %v790_v36 = vld [vmem:[%s5296_s1 + $0xd8] sm:$0xff] }
  0x25   : > { %811 = vperm.xlu0 %4290, %v764_v13   ;;  %1237 = vmatpush.bf16.msra.mxu1 %v4028_v39 }
  0x26   : > { %866 = vperm.xlu1 %4291, %v775_v14   ;;  %4274 = vmatpush.bf16.msra.mxu3 %v4028_v39  ;;  %v4009_v14 = vld [vmem:[%s4383_s18 + $0x48] sm:$0xff] }
  0x27   : > { %871 = vperm.xlu2 %4292, %v776_v35  }
  0x29   : > { %1238 = vmatpush.bf16.msra.mxu1 %v4027_v43 }
  0x2a   : > { %4275 = vmatpush.bf16.msra.mxu3 %v4027_v43 }
  0x2d   : > { %816 = vperm.xlu0 %4290, %v765_v15   ;;  %1239 = vmatpush.bf16.msra.mxu1 %v4026_v46 }
  0x2e   : > { %821 = vperm.xlu1 %4291, %v766_v16   ;;  %4276 = vmatpush.bf16.msra.mxu3 %v4026_v46  ;;  %v4058_v46 = vld [vmem:[%s5298_s3 + $0xb8] sm:$0xff] }
  0x2f   : > { %876 = vperm.xlu2 %4292, %v777_v41  }
  0x30   : > { %3326 = vmatmul.msk.bf16.gmra.mxu0 %vm459_vm0, %v4002_v17 }
  0x31   : > { %1240 = vmatpush.bf16.msra.mxu1 %v4025_v49 }
  0x32   : > { %4277 = vmatpush.bf16.msra.mxu3 %v4025_v49 }
  0x35   : > { %881 = vperm.xlu0 %4290, %v778_v19   ;;  %v798_v19 = vld [vmem:[%s5296_s1 + $0x118] sm:$0xff] }
  0x36   : > { %886 = vperm.xlu1 %4291, %v779_v22   ;;  %1624 = vmatpush.bf16.msrb.mxu3 %v4058_v46  ;;  %v4014_v46 = vld [vmem:[%s4383_s18 + $0x70] sm:$0xff] }
  0x37   : > { %891 = vperm.xlu2 %4292, %v780_v48  }
  0x3d   : > { %896 = vperm.xlu0 %4290, %v781_v21  }
  0x3e   : > { %901 = vperm.xlu1 %4291, %v782_v25  }
  0x3f   : > { %956 = vperm.xlu2 %4292, %v793_v55  }
  0x40   : > { %3327 = vmatmul.msk.bf16.gmra.mxu0 %vm459_vm0, %v4003_v18 }
  0x45   : > { %961 = vperm.xlu0 %4290, %v794_v23  }
  0x46   : > { %966 = vperm.xlu1 %4291, %v795_v28  }
  0x47   : > { %971 = vperm.xlu2 %4292, %v796_v0  }
  0x4d   : > { %906 = vperm.xlu0 %4290, %v783_v26  }
  0x4e   : > { %911 = vperm.xlu1 %4291, %v784_v32   ;;  %v4010_v32 = vld [vmem:[%s4383_s18 + $0x50] sm:$0xff] }
  0x4f   : > { %916 = vperm.xlu2 %4292, %v785_v11   ;;  %v4045_v11 = vld [vmem:[%s5298_s3 + $0x78] sm:$0xff] }
  0x50   : > { %3328 = vmatmul.msk.bf16.gmra.mxu0 %vm459_vm0, %v4004_v20  ;;  %1420 = vmatpush.bf16.msra.mxu2 %v4045_v11 }
  0x55   : > { %921 = vperm.xlu0 %4290, %v786_v29   ;;  %v799_v29 = vld [vmem:[%s5296_s1 + $0x120] sm:$0xff] }
  0x56   : > { %976 = vperm.xlu1 %4291, %v797_v37  }
  0x57   : > { %981 = vperm.xlu2 %4292, %v798_v19  }
  0x5d   : > { %926 = vperm.xlu0 %4290, %v787_v33  }
  0x5e   : > { %931 = vperm.xlu1 %4291, %v788_v44  }
  0x5f   : > { %986 = vperm.xlu2 %4292, %v799_v29  }
  0x60   : > { %3329 = vmatmul.msk.bf16.gmra.mxu0 %vm459_vm0, %v4005_v24 }
  0x65   : > { %991 = vperm.xlu0 %4290, %v800_v38  }
  0x66   : > { %936 = vperm.xlu1 %4291, %v789_v52   ;;  %v4011_v52 = vld [vmem:[%s4383_s18 + $0x58] sm:$0xff] }
  0x67   : > { %941 = vperm.xlu2 %4292, %v790_v36  }
  0x69   : > { %v4510_v50 = vpop.permute.xlu2 %846 }
  0x6d   : > { %996 = vperm.xlu0 %4290, %v801_v45   ;;  %v791_v45 = vld [vmem:[%s5296_s1 + $0xe0] sm:$0xff] }
  0x6e   : > { %1001 = vperm.xlu1 %4291, %v802_v63  }
  0x6f   : > { %946 = vperm.xlu2 %4292, %v791_v45  }
  0x70   : > { %3330 = vmatmul.msk.bf16.gmra.mxu0 %vm459_vm0, %v4006_v30 }
  0x71   : > { %v4531_v59 = vpop.permute.xlu2 %851 }
  0x75   : > { %951 = vperm.xlu0 %4290, %v792_v53  }
  0x76   : > { %1006 = vperm.xlu1 %4291, %v803_v10  }
  0x79   : > { %v807_v7 = vpop.permute.xlu2 %806 }
  0x7f   : > { %v4483_v40 = vpop.permute.xlu0 %826 }
  0x80   : > { %3331 = vmatmul.msk.bf16.gmra.mxu0 %vm459_vm0, %v4007_v42  ;;  %v4502_v47 = vpop.permute.xlu1 %836 }
  0x87   : > { %v4512_v51 = vpop.permute.xlu0 %831 }
  0x88   : > { %v4520_v54 = vpop.permute.xlu1 %841 }
  0x8d   : > { %v532_v58 = vpop.f32.mrf.mxu0 }
  0x8e   : > { %v638_v61 = vmul.f32 %v4528_v56, %v532_v58 }
  0x8f   : > { %v4533_v60 = vpop.permute.xlu0 %856 }
  0x90   : > { %3332 = vmatmul.msk.bf16.gmra.mxu0 %vm459_vm0, %v4008_v57  ;;  %v681_v1 = vadd.f32 %v4539_v62, %v638_v61  ;;  %v4549_v3 = vpop.permute.xlu1 %861  ;;  %v4057_v57 = vld [vmem:[%s5298_s3 + $0xb0] sm:$0xff] }
  0x91   : > { %1625 = vmatpush.bf16.msrb.mxu3 %v4057_v57 }
  0x92   : > { %v722_v5 = vmax.f32 %v681_v1, 0.0  ;;  %v4055_v1 = vld [vmem:[%s5298_s3 + $0xa0] sm:$0xff] }
  0x94   : > { %v1009_v12 = vmul.f32 %v807_v7, %v722_v5 }
  0x95   : > { %v534_v2 = vpop.f32.mrf.mxu0 }
  0x96   : > { %v639_v4 = vmul.f32 %v4528_v56, %v534_v2 }
  0x97   : > { %v812_v8 = vpop.permute.xlu0 %811 }
  0x98   : > { %v682_v6 = vadd.f32 %v4539_v62, %v639_v4  ;;  %v4560_v17 = vpop.permute.xlu1 %866 }
  0x9a   : > { %v723_v9 = vmax.f32 %v682_v6, 0.0  ;;  %v4054_v6 = vld [vmem:[%s5298_s3 + $0x98] sm:$0xff] }
  0x9c   : > { %v1010_v13 = vmul.f32 %v812_v8, %v723_v9  ;;  %v4012_v9 = vld [vmem:[%s4383_s18 + $0x60] sm:$0xff] }
  0x9d   : > { %v537_v15 = vpop.f32.mrf.mxu0 }
  0x9e   : > { %v4154_v16 = vpack.c.bf16 %v1010_v13, %v1009_v12  ;;  %v640_v18 = vmul.f32 %v4528_v56, %v537_v15  ;;  %v4053_v13 = vld [vmem:[%s5298_s3 + $0x90] sm:$0xff] }
  0x9f   : > { %v817_v26 = vpop.permute.xlu0 %816 }
  0xa0   : > { %4155 = vst [vmem:[#allocation2] sm:$0xff] %v4154_v16   ;;  %3333 = vmatmul.msk.bf16.gmra.mxu0 %vm459_vm0, %v4009_v14  ;;  %v683_v20 = vadd.f32 %v4539_v62, %v640_v18  ;;  %v822_v27 = vpop.permute.xlu1 %821  ;;  %v4043_v18 = vld [vmem:[%s5298_s3 + $0x68] sm:$0xff] }
  0xa2   : > { %v724_v24 = vmax.f32 %v683_v20, 0.0 }
  0xa4   : > { %v1011_v30 = vmul.f32 %v817_v26, %v724_v24  ;;  %v4042_v24 = vld [vmem:[%s5298_s3 + $0x60] sm:$0xff] }
  0xa5   : > { %v539_v21 = vpop.f32.mrf.mxu0 }
  0xa6   : > { %v641_v22 = vmul.f32 %v4528_v56, %v539_v21  ;;  %v4051_v21 = vld [vmem:[%s5298_s3 + $0x80] sm:$0xff] }
  0xa7   : > { %v4021_v23 = vld [vmem:[#allocation2] sm:$0xff] }
  0xa8   : > { %v684_v25 = vadd.f32 %v4539_v62, %v641_v22  ;;  %1241 = vmatmul.bf16.vlgmr.msra.gmra.mxu1 %v4021_v23 }
  0xaa   : > { %v725_v28 = vmax.f32 %v684_v25, 0.0 }
  0xac   : > { %v1012_v31 = vmul.f32 %v822_v27, %v725_v28  ;;  %v4013_v28 = vld [vmem:[%s4383_s18 + $0x68] sm:$0xff] }
  0xad   : > { %v542_v33 = vpop.f32.mrf.mxu0 }
  0xae   : > { %v4159_v34 = vpack.c.bf16 %v1012_v31, %v1011_v30  ;;  %v642_v35 = vmul.f32 %v4528_v56, %v542_v33  ;;  %v4041_v30 = vld [vmem:[%s5298_s3 + $0x58] sm:$0xff]  ;;  %v4040_v33 = vld [vmem:[%s5298_s3 + $0x50] sm:$0xff] }
  0xb0   : > { %4251 = vst [vmem:[#allocation2 + $0x8] sm:$0xff] %v4159_v34   ;;  %3334 = vmatmul.msk.bf16.gmra.mxu0 %vm459_vm0, %v4010_v32  ;;  %v685_v37 = vadd.f32 %v4539_v62, %v642_v35  ;;  %v4039_v34 = vld [vmem:[%s5298_s3 + $0x48] sm:$0xff] }
  0xb2   : > { %v726_v42 = vmax.f32 %v685_v37, 0.0 }
  0xb4   : > { %v1013_v48 = vmul.f32 %v4483_v40, %v726_v42  ;;  %v4056_v40 = vld [vmem:[%s5298_s3 + $0xa8] sm:$0xff] }
  0xb5   : > { %v544_v38 = vpop.f32.mrf.mxu0  ;;  %1626 = vmatpush.bf16.msrb.mxu3 %v4056_v40 }
  0xb6   : > { %v643_v39 = vmul.f32 %v4528_v56, %v544_v38 }
  0xb7   : > { %v4022_v41 = vld [vmem:[#allocation2 + $0x8] sm:$0xff] }
  0xb8   : > { %v686_v43 = vadd.f32 %v4539_v62, %v643_v39  ;;  %1246 = vmatmul.bf16.gmra.mxu1 %v4022_v41  ;;  %v4038_v41 = vld [vmem:[%s5298_s3 + $0x40] sm:$0xff] }
  0xb9   : > { %1627 = vmatpush.bf16.msrb.mxu3 %v4055_v1 }
  0xba   : > { %v727_v44 = vmax.f32 %v686_v43, 0.0 }
  0xbc   : > { %v1014_v49 = vmul.f32 %v4512_v51, %v727_v44 }
  0xbd   : > { %v547_v53 = vpop.f32.mrf.mxu0  ;;  %1628 = vmatpush.bf16.msrb.mxu3 %v4054_v6 }
  0xbe   : > { %v4164_v55 = vpack.c.bf16 %v1014_v49, %v1013_v48  ;;  %v644_v58 = vmul.f32 %v4528_v56, %v547_v53  ;;  %v4046_v49 = vld [vmem:[#allocation2] sm:$0xff]  ;;  %v4047_v53 = vld [vmem:[#allocation2 + $0x8] sm:$0xff] }
  0xbf   : > { %v1535_v57 = vshll.u32 %v4046_v49, 16 }
  0xc0   : > { %4252 = vst [vmem:[#allocation2 + $0x10] sm:$0xff] %v4164_v55   ;;  %3335 = vmatmul.msk.bf16.gmra.mxu0 %vm459_vm0, %v4011_v52  ;;  %v687_v51 = vadd.f32 %v4539_v62, %v644_v58  ;;  %v1540_v58 = vshll.u32 %v4047_v53, 16 }
  0xc1   : > { %1629 = vmatpush.bf16.msrb.mxu3 %v4053_v13 }
  0xc2   : > { %v728_v2 = vmax.f32 %v687_v51, 0.0 }
  0xc4   : > { %v1015_v7 = vmul.f32 %v4502_v47, %v728_v2  ;;  %v4044_v47 = vld [vmem:[%s5298_s3 + $0x70] sm:$0xff] }
  0xc5   : > { %v549_v61 = vpop.f32.mrf.mxu0  ;;  %1421 = vmatpush.bf16.msra.mxu2 %v4044_v47 }
  0xc6   : > { %v645_v63 = vmul.f32 %v4528_v56, %v549_v61  ;;  %v1533_v61 = vshrl.u32 %v4046_v49, 16 }
  0xc7   : > { %v4023_v0 = vld [vmem:[#allocation2 + $0x10] sm:$0xff] }
  0xc8   : > { %v688_v4 = vadd.f32 %v4539_v62, %v645_v63  ;;  %1251 = vmatmul.bf16.vlgmr.msra.gmra.mxu3 %v4023_v0  ;;  %v1542_v63 = vrot.slane %v1540_v58, 1  ;;  %v887_v58 = vpop.permute.xlu1 %886 }
  0xc9   : > { %1422 = vmatpush.bf16.msra.mxu2 %v4043_v18 }
  0xca   : > { %v729_v5 = vmax.f32 %v688_v4, 0.0 }
  0xcc   : > { %v1016_v8 = vmul.f32 %v4520_v54, %v729_v5  ;;  %v4052_v54 = vld [vmem:[%s5298_s3 + $0x88] sm:$0xff]  ;;  %v872_v5 = vpop.permute.xlu2 %871 }
  0xcd   : > { %v552_v10 = vpop.f32.mrf.mxu0  ;;  %1630 = vmatpush.bf16.msrb.mxu3 %v4052_v54  ;;  %1423 = vmatpush.bf16.msra.mxu2 %v4042_v24 }
  0xce   : > { %v4169_v12 = vpack.c.bf16 %v1016_v8, %v1015_v7  ;;  %v646_v14 = vmul.f32 %v4528_v56, %v552_v10 }
  0xd0   : > { %4253 = vst [vmem:[#allocation2 + $0x18] sm:$0xff] %v4169_v12   ;;  %3336 = vmatmul.msk.bf16.gmra.mxu0 %vm459_vm0, %v4012_v9  ;;  %v689_v15 = vadd.f32 %v4539_v62, %v646_v14  ;;  %v4015_v9 = vld [vmem:[%s4383_s18 + $0x78] sm:$0xff]  ;;  %v4048_v12 = vld [vmem:[#allocation2 + $0x10] sm:$0xff] }
  0xd1   : > { %1631 = vmatpush.bf16.msrb.mxu3 %v4051_v21  ;;  %1424 = vmatpush.bf16.msra.mxu2 %v4041_v30  ;;  %v1548_v47 = vshll.u32 %v4048_v12, 16 }
  0xd2   : > { %v730_v22 = vmax.f32 %v689_v15, 0.0 }
  0xd4   : > { %v1017_v26 = vmul.f32 %v4510_v50, %v730_v22 }
  0xd5   : > { %v554_v16 = vpop.f32.mrf.mxu0  ;;  %1425 = vmatpush.bf16.msra.mxu2 %v4040_v33 }
  0xd6   : > { %v647_v19 = vmul.f32 %v4528_v56, %v554_v16 }
  0xd7   : > { %v4024_v20 = vld [vmem:[#allocation2 + $0x18] sm:$0xff] }
  0xd8   : > { %v690_v23 = vadd.f32 %v4539_v62, %v647_v19  ;;  %1256 = vmatmul.bf16.gmra.mxu3 %v4024_v20  ;;  %v1550_v19 = vrot.slane %v1548_v47, 1 }
  0xd9   : > { %1426 = vmatpush.bf16.msra.mxu2 %v4039_v34 }
  0xda   : > { %v731_v25 = vmax.f32 %v690_v23, 0.0 }
  0xdc   : > { %v1018_v27 = vmul.f32 %v4531_v59, %v731_v25 }
  0xdd   : > { %v557_v29 = vpop.f32.mrf.mxu0  ;;  %1427 = vmatpush.bf16.msra.mxu2 %v4038_v41 }
  0xde   : > { %v4174_v31 = vpack.c.bf16 %v1018_v27, %v1017_v26  ;;  %v648_v32 = vmul.f32 %v4528_v56, %v557_v29  ;;  %v877_v29 = vpop.permute.xlu2 %876 }
  0xe0   : > { %4254 = vst [vmem:[#allocation2 + $0x20] sm:$0xff] %v4174_v31   ;;  %3337 = vmatmul.msk.bf16.gmra.mxu0 %vm459_vm0, %v4013_v28  ;;  %v691_v50 = vadd.f32 %v4539_v62, %v648_v32  ;;  %v882_v28 = vpop.permute.xlu0 %881 }
  0xe2   : > { %v732_v37 = vmax.f32 %v691_v50, 0.0 }
  0xe4   : > { %v1019_v44 = vmul.f32 %v4533_v60, %v732_v37  ;;  %v1537_v60 = vrot.slane %v1535_v57, 1  ;;  %v4049_v37 = vld [vmem:[#allocation2 + $0x18] sm:$0xff] }
  0xe5   : > { %v559_v59 = vpop.f32.mrf.mxu0 }
  0xe6   : > { %v649_v35 = vmul.f32 %v4528_v56, %v559_v59  ;;  %v1538_v2 = vor.u32 %v1537_v60, %v1533_v61  ;;  %v4016_v59 = vld [vmem:[%s4383_s18 + $0x80] sm:$0xff]  ;;  %v4071_v61 = vld [vmem:[%s5298_s3 + $0xf8] sm:$0xff] }
  0xe7   : > { %v1140_v36 = vld [vmem:[#allocation2 + $0x20] sm:$0xf]  ;;  %1799 = vmatpush.bf16.msrb.mxu1 %v4071_v61 }
  0xe8   : > { %v692_v38 = vadd.f32 %v4539_v62, %v649_v35  ;;  %v1174_v39 = vunpack.c.l.b16 %v1140_v36  ;;  %v1543_v6 = vsel %vm1327_vm1, %v1538_v2, %v1542_v63  ;;  %v3495_v2 = vld [vmem:[#allocation2 + $0x20] sm:$0xf] }
  0xea   : > { %v733_v42 = vmax.f32 %v692_v38, 0.0  ;;  %v1179_v43 = vpack.c.b16 %v1174_v39, %v1174_v39  ;;  %v1556_v39 = vshll.u32 %v4049_v37, 16 }
  0xec   : > { %v1020_v45 = vmul.f32 %v4549_v3, %v733_v42  ;;  %1261 = vmatmul.bf16.gmra.mxu3 %v1179_v43 }
  0xed   : > { %v562_v48 = vpop.f32.mrf.mxu0 }
  0xee   : > { %v4179_v52 = vpack.c.bf16 %v1020_v45, %v1019_v44  ;;  %v650_v55 = vmul.f32 %v4528_v56, %v562_v48  ;;  %v1552_v44 = vshrl.u32 %v4048_v12, 16  ;;  %v1558_v45 = vrot.slane %v1556_v39, 1  ;;  %v4093_v39 = vld [vmem:[%s5298_s3 + $0x158] sm:$0xff] }
  0xf0   : > { %4255 = vst [vmem:[#allocation2 + $0x28] sm:$0xff] %v4179_v52   ;;  %3338 = vmatmul.msk.bf16.gmra.mxu0 %vm459_vm0, %v4014_v46  ;;  %v693_v40 = vadd.f32 %v4539_v62, %v650_v55  ;;  %v1554_v52 = vor.u32 %v1552_v44, %v1550_v19  ;;  %v4065_v44 = vld [vmem:[%s5298_s3 + $0xc8] sm:$0xff] }
  0xf2   : > { %v734_v0 = vmax.f32 %v693_v40, 0.0  ;;  %v892_v40 = vpop.permute.xlu2 %891 }
  0xf4   : > { %v1021_v7 = vmul.f32 %v4560_v17, %v734_v0  ;;  %v1544_v17 = vshrl.u32 %v4047_v53, 16 }
  0xf5   : > { %v564_v51 = vpop.f32.mrf.mxu0 }
  0xf6   : > { %v651_v3 = vmul.f32 %v4528_v56, %v564_v51  ;;  %v1546_v24 = vor.u32 %v1544_v17, %v1542_v63  ;;  %v1559_v51 = vsel %vm1327_vm1, %v1554_v52, %v1558_v45  ;;  %v1560_v17 = vshrl.u32 %v4049_v37, 16 }
  0xf7   : > { %v4033_v13 = vld [vmem:[#allocation2 + $0x28] sm:$0xff] }
  0xf8   : > { %v694_v1 = vadd.f32 %v4539_v62, %v651_v3  ;;  %v1331_v54 = vshll.u32 %v4033_v13, 16  ;;  %v1329_v25 = vshrl.u32 %v4033_v13, 16  ;;  %v1551_v30 = vsel %vm1327_vm1, %v1546_v24, %v1550_v19  ;;  %v4069_v13 = vld [vmem:[%s5298_s3 + $0xe8] sm:$0xff] }
  0xfa   : > { %v735_v4 = vmax.f32 %v694_v1, 0.0  ;;  %v1333_v21 = vrot.slane %v1331_v54, 1  ;;  %v4017_v1 = vld [vmem:[%s4383_s18 + $0x88] sm:$0xff]  ;;  %v4745_v52 = vpop.permute.xlu2 %956 }
  0xfc   : > { %v1022_v8 = vmul.f32 %v872_v5, %v735_v4  ;;  %1632 = vmatmul.bf16.vlgmr.msrb.gmra.mxu3 %v1543_v6  ;;  %v1334_v31 = vor.u32 %v1333_v21, %v1329_v25  ;;  %v4050_v4 = vld [vmem:[#allocation2 + $0x20] sm:$0x10]  ;;  %v1562_v25 = vor.u32 %v1560_v17, %v1558_v45  ;;  %v4092_v45 = vld [vmem:[%s5298_s3 + $0x150] sm:$0xff] }
  0xfd   : > { %v567_v10 = vpop.f32.mrf.mxu0  ;;  %v4068_v21 = vld [vmem:[%s5298_s3 + $0xe0] sm:$0xff] }
  0xfe   : > { %v4184_v11 = vpack.c.bf16 %v1022_v8, %v1021_v7  ;;  %v652_v14 = vmul.f32 %v4528_v56, %v567_v10  ;;  %v4687_v8 = vor.u32 %v4050_v4, %v3495_v2  ;;  %v4097_v10 = vld [vmem:[%s5298_s3 + $0x178] sm:$0xff] }
  0xff   : > { %2218 = vmatpush.bf16.msra.mxu3 %v4097_v10  ;;  %v4019_v10 = vld [vmem:[%s4383_s18 + $0x98] sm:$0xff] }
 0x100   : > { %4256 = vst [vmem:[#allocation2 + $0x30] sm:$0xff] %v4184_v11   ;;  %3339 = vmatmul.msk.bf16.gmra.mxu0 %vm459_vm0, %v4015_v9  ;;  %v695_v15 = vadd.f32 %v4539_v62, %v652_v14  ;;  %v4070_v9 = vld [vmem:[%s5298_s3 + $0xf0] sm:$0xff]  ;;  %v1564_v12 = vshll.u32 %v4687_v8, 16 }
 0x101   : > { %1800 = vmatpush.bf16.msrb.mxu1 %v4070_v9  ;;  %v4096_v14 = vld [vmem:[%s5298_s3 + $0x170] sm:$0xff] }
 0x102   : > { %v736_v22 = vmax.f32 %v695_v15, 0.0  ;;  %v1566_v19 = vrot.slane %v1564_v12, 1 }
 0x103   : > { %2219 = vmatpush.bf16.msra.mxu3 %v4096_v14 }
 0x104   : > { %v1023_v33 = vmul.f32 %v877_v29, %v736_v22  ;;  %v4095_v22 = vld [vmem:[%s5298_s3 + $0x168] sm:$0xff]  ;;  %v1567_v29 = vsel %vm1327_vm1, %v1562_v25, %v1566_v19 }
 0x105   : > { %v569_v16 = vpop.f32.mrf.mxu0  ;;  %1801 = vmatpush.bf16.msrb.mxu1 %v4069_v13 }
 0x106   : > { %v653_v18 = vmul.f32 %v4528_v56, %v569_v16  ;;  %v897_v16 = vpop.permute.xlu0 %896 }
 0x107   : > { %v4034_v20 = vld [vmem:[#allocation2 + $0x30] sm:$0xff]  ;;  %2220 = vmatpush.bf16.msra.mxu3 %v4095_v22 }
 0x108   : > { %v696_v23 = vadd.f32 %v4539_v62, %v653_v18  ;;  %v1336_v26 = vshll.u32 %v4034_v20, 16  ;;  %v1340_v53 = vshrl.u32 %v4034_v20, 16  ;;  %v902_v18 = vpop.permute.xlu1 %901 }
 0x109   : > { %1802 = vmatpush.bf16.msrb.mxu1 %v4068_v21 }
 0x10a   : > { %v737_v27 = vmax.f32 %v696_v23, 0.0  ;;  %v1338_v32 = vrot.slane %v1336_v26, 1 }
 0x10c   : > { %v1024_v50 = vmul.f32 %v882_v28, %v737_v27  ;;  %1637 = vmatmul.bf16.gmra.mxu3 %v1551_v30  ;;  %v1339_v35 = vsel %vm1327_vm1, %v1334_v31, %v1338_v32  ;;  %v1342_v60 = vor.u32 %v1340_v53, %v1338_v32  ;;  %v4067_v32 = vld [vmem:[%s5298_s3 + $0xd8] sm:$0xff] }
 0x10d   : > { %v572_v34 = vpop.f32.mrf.mxu0  ;;  %1428 = vmatmul.bf16.vlgmr.msra.gmra.mxu2 %v1339_v35  ;;  %1803 = vmatpush.bf16.msrb.mxu1 %v4067_v32 }
 0x10e   : > { %v4189_v36 = vpack.c.bf16 %v1024_v50, %v1023_v33  ;;  %v654_v38 = vmul.f32 %v4528_v56, %v572_v34  ;;  %v4094_v33 = vld [vmem:[%s5298_s3 + $0x160] sm:$0xff]  ;;  %v4018_v34 = vld [vmem:[%s4383_s18 + $0x90] sm:$0xff] }
 0x10f   : > { %2221 = vmatpush.bf16.msra.mxu3 %v4094_v33 }
 0x110   : > { %4257 = vst [vmem:[#allocation2 + $0x38] sm:$0xff] %v4189_v36   ;;  %3340 = vmatmul.msk.bf16.gmra.mxu0 %vm459_vm0, %v4016_v59  ;;  %v697_v41 = vadd.f32 %v4539_v62, %v654_v38  ;;  %v4066_v38 = vld [vmem:[%s5298_s3 + $0xd0] sm:$0xff] }
 0x111   : > { %1804 = vmatpush.bf16.msrb.mxu1 %v4066_v38 }
 0x112   : > { %v738_v48 = vmax.f32 %v697_v41, 0.0 }
 0x113   : > { %2222 = vmatpush.bf16.msra.mxu3 %v4093_v39 }
 0x114   : > { %v1025_v63 = vmul.f32 %v887_v58, %v738_v48 }
 0x115   : > { %v574_v42 = vpop.f32.mrf.mxu0  ;;  %1805 = vmatpush.bf16.msrb.mxu1 %v4065_v44 }
 0x116   : > { %v655_v43 = vmul.f32 %v4528_v56, %v574_v42  ;;  %v4733_v42 = vpop.permute.xlu0 %961 }
 0x117   : > { %v4035_v46 = vld [vmem:[#allocation2 + $0x38] sm:$0xff]  ;;  %2223 = vmatpush.bf16.msra.mxu3 %v4092_v45 }
 0x118   : > { %v698_v49 = vadd.f32 %v4539_v62, %v655_v43  ;;  %v1344_v55 = vshll.u32 %v4035_v46, 16  ;;  %v1348_v26 = vshrl.u32 %v4035_v46, 16  ;;  %v4735_v43 = vpop.permute.xlu1 %966 }
 0x11a   : > { %v739_v57 = vmax.f32 %v698_v49, 0.0  ;;  %v1346_v3 = vrot.slane %v1344_v55, 1 }
 0x11c   : > { %v1026_v0 = vmul.f32 %v892_v40, %v739_v57  ;;  %1642 = vmatmul.bf16.gmra.mxu3 %v1559_v51  ;;  %v1347_v6 = vsel %vm1327_vm1, %v1342_v60, %v1346_v3  ;;  %v1350_v30 = vor.u32 %v1348_v26, %v1346_v3  ;;  %v4064_v57 = vld [vmem:[%s5298_s3 + $0xc0] sm:$0xff]  ;;  %v1568_v51 = vshrl.u32 %v4687_v8, 16  ;;  %v4091_v3 = vld [vmem:[%s5298_s3 + $0x148] sm:$0xff] }
 0x11d   : > { %v577_v5 = vpop.f32.mrf.mxu0  ;;  %1433 = vmatmul.bf16.gmra.mxu2 %v1347_v6  ;;  %1806 = vmatpush.bf16.msrb.mxu1 %v4064_v57 }
 0x11e   : > { %v4194_v7 = vpack.c.bf16 %v1026_v0, %v1025_v63  ;;  %v656_v11 = vmul.f32 %v4528_v56, %v577_v5  ;;  %v1570_v63 = vor.u32 %v1568_v51, %v1566_v19  ;;  %2224 = vmatpush.bf16.msra.mxu3 %v4091_v3  ;;  %v907_v2 = vpop.permute.xlu0 %906  ;;  %v4090_v5 = vld [vmem:[%s5298_s3 + $0x140] sm:$0xff] }
 0x120   : > { %4258 = vst [vmem:[#allocation2 + $0x40] sm:$0xff] %v4194_v7   ;;  %3341 = vmatmul.msk.bf16.gmra.mxu0 %vm459_vm0, %v4017_v1  ;;  %v699_v47 = vadd.f32 %v4539_v62, %v656_v11  ;;  %v912_v4 = vpop.permute.xlu1 %911 }
 0x122   : > { %v740_v23 = vmax.f32 %v699_v47, 0.0  ;;  %2225 = vmatpush.bf16.msra.mxu3 %v4090_v5  ;;  %v4763_v47 = vpop.permute.xlu2 %971 }
 0x124   : > { %v1027_v50 = vmul.f32 %v897_v16, %v740_v23 }
 0x125   : > { %v579_v54 = vpop.f32.mrf.mxu0 }
 0x126   : > { %v657_v15 = vmul.f32 %v4528_v56, %v579_v54  ;;  %v922_v23 = vpop.permute.xlu0 %921 }
 0x127   : > { %v4706_v20 = vld [vmem:[#allocation2 + $0x40] sm:$0xff] }
 0x128   : > { %v700_v24 = vadd.f32 %v4539_v62, %v657_v15  ;;  %v1352_v27 = vshll.u32 %v4706_v20, 16  ;;  %v1356_v0 = vshrl.u32 %v4706_v20, 16  ;;  %v4084_v15 = vld [vmem:[%s5298_s3 + $0x138] sm:$0xff] }
 0x129   : > { %2009 = vmatpush.bf16.msrb.mxu2 %v4084_v15 }
 0x12a   : > { %v741_v28 = vmax.f32 %v700_v24, 0.0  ;;  %v1354_v31 = vrot.slane %v1352_v27, 1  ;;  %v917_v24 = vpop.permute.xlu2 %916 }
 0x12c   : > { %v1028_v59 = vmul.f32 %v902_v18, %v741_v28  ;;  %1647 = vmatmul.bf16.gmra.mxu3 %v1567_v29  ;;  %v1355_v36 = vsel %vm1327_vm1, %v1350_v30, %v1354_v31  ;;  %v1358_v8 = vor.u32 %v1356_v0, %v1354_v31  ;;  %v347_v18 = vld [vmem:[%s4383_s18 + $0xa0] sm:$0xf] }
 0x12d   : > { %v582_v35 = vpop.f32.mrf.mxu0  ;;  %1438 = vmatmul.bf16.gmra.mxu2 %v1355_v36  ;;  %v431_v21 = vunpack.c.l.b16 %v347_v18  ;;  %v4779_v36 = vpop.permute.xlu1 %976 }
 0x12e   : > { %v4199_v37 = vpack.c.bf16 %v1028_v59, %v1027_v50  ;;  %v658_v41 = vmul.f32 %v4528_v56, %v582_v35  ;;  %v4083_v35 = vld [vmem:[%s5298_s3 + $0x130] sm:$0xff] }
 0x12f   : > { %v452_v29 = vpack.c.b16 %v431_v21, %v431_v21  ;;  %2010 = vmatpush.bf16.msrb.mxu2 %v4083_v35 }
 0x130   : > { %4259 = vst [vmem:[#allocation2 + $0x48] sm:$0xff] %v4199_v37   ;;  %3342 = vmatmul.msk.bf16.gmra.mxu0 %vm459_vm0, %v4018_v34  ;;  %v701_v46 = vadd.f32 %v4539_v62, %v658_v41 }
 0x132   : > { %v742_v58 = vmax.f32 %v701_v46, 0.0 }
 0x134   : > { %v1029_v6 = vmul.f32 %v907_v2, %v742_v58  ;;  %v927_v2 = vpop.permute.xlu0 %926 }
 0x135   : > { %v584_v48 = vpop.f32.mrf.mxu0 }
 0x136   : > { %v659_v49 = vmul.f32 %v4528_v56, %v584_v48 }
 0x137   : > { %v3427_v53 = vld [vmem:[#allocation2 + $0x48] sm:$0xf]  ;;  %v4037_v55 = vld [vmem:[#allocation2 + $0x48] sm:$0x10] }
 0x138   : > { %v702_v40 = vadd.f32 %v4539_v62, %v659_v49  ;;  %v3428_v60 = vor.u32 %v4037_v55, %v3427_v53  ;;  %v4785_v53 = vpop.permute.xlu2 %981 }
 0x13a   : > { %v743_v61 = vmax.f32 %v702_v40, 0.0  ;;  %v1360_v1 = vshll.u32 %v3428_v60, 16  ;;  %v1364_v25 = vshrl.u32 %v3428_v60, 16 }
 0x13c   : > { %v1030_v7 = vmul.f32 %v912_v4, %v743_v61  ;;  %1652 = vmatmul.bf16.gmra.mxu3 %v1570_v63  ;;  %v1362_v9 = vrot.slane %v1360_v1, 1  ;;  %v932_v4 = vpop.permute.xlu1 %931 }
 0x13d   : > { %v587_v11 = vpop.f32.mrf.mxu0 }
 0x13e   : > { %v4204_v12 = vpack.c.bf16 %v1030_v7, %v1029_v6  ;;  %v1363_v13 = vsel %vm1327_vm1, %v1358_v8, %v1362_v9  ;;  %v660_v14 = vmul.f32 %v4528_v56, %v587_v11  ;;  %v1366_v31 = vor.u32 %v1364_v25, %v1362_v9 }
 0x13f   : > { %1443 = vmatmul.bf16.gmra.mxu2 %v1363_v13 }
 0x140   : > { %4260 = vst [vmem:[#allocation2 + $0x50] sm:$0xff] %v4204_v12   ;;  %3343 = vmatmul.msk.bf16.gmra.mxu0 %vm459_vm0, %v4019_v10  ;;  %v703_v54 = vadd.f32 %v4539_v62, %v660_v14  ;;  %v4796_v18 = vpop.permute.xlu2 %986 }
 0x142   : > { %v744_v19 = vmax.f32 %v703_v54, 0.0 }
 0x144   : > { %v1031_v26 = vmul.f32 %v917_v24, %v744_v19  ;;  %v4081_v19 = vld [vmem:[%s5298_s3 + $0x120] sm:$0xff] }
 0x145   : > { %v589_v16 = vpop.f32.mrf.mxu0 }
 0x146   : > { %v661_v17 = vmul.f32 %v4528_v56, %v589_v16  ;;  %v4082_v16 = vld [vmem:[%s5298_s3 + $0x128] sm:$0xff] }
 0x147   : > { %v3683_v32 = vld [vmem:[#allocation2 + $0x50] sm:$0xe]  ;;  %v4085_v33 = vld [vmem:[#allocation2 + $0x50] sm:$0xf0]  ;;  %2011 = vmatpush.bf16.msrb.mxu2 %v4082_v16 }
 0x148   : > { %v704_v20 = vadd.f32 %v4539_v62, %v661_v17  ;;  %v3684_v34 = vor.u32 %v4085_v33, %v3683_v32  ;;  %v3547_v37 = vld [vmem:[#allocation2 + $0x50] sm:$0xe]  ;;  %v4059_v38 = vld [vmem:[#allocation2 + $0x50] sm:$0xf0]  ;;  %v937_v33 = vpop.permute.xlu1 %936 }
 0x149   : > { %v3548_v44 = vor.u32 %v4059_v38, %v3547_v37 }
 0x14a   : > { %v745_v22 = vmax.f32 %v704_v20, 0.0  ;;  %v2122_v45 = vshrl.u32 %v3684_v34, 16  ;;  %v2125_v48 = vshll.u32 %v3684_v34, 16 }
 0x14b   : > { %v4772_v28 = vpop.f32.mrf.mxu3  ;;  %v1737_v51 = vrot.slane %v3548_v44, 1  ;;  %2012 = vmatpush.bf16.msrb.mxu2 %v4081_v19 }
 0x14c   : > { %v1032_v27 = vmul.f32 %v922_v23, %v745_v22  ;;  %v2124_v60 = vrot.slane %v2122_v45, 1  ;;  %v2127_v61 = vrot.slane %v2125_v48, 2  ;;  %v4803_v22 = vpop.permute.xlu0 %991  ;;  %v4110_v45 = vld [vmem:[%s5298_s3 + $0x1b8] sm:$0xff] }
 0x14d   : > { %v592_v30 = vpop.f32.mrf.mxu0  ;;  %2422 = vmatpush.bf16.msra.mxu1 %v4110_v45 }
 0x14e   : > { %v4209_v50 = vpack.c.bf16 %v1032_v27, %v1031_v26  ;;  %v662_v59 = vmul.f32 %v4528_v56, %v592_v30  ;;  %v2128_v12 = vor.u32 %v2127_v61, %v2124_v60 }
 0x14f   : > { %1448 = vmatmul.bf16.gmra.mxu2 %v1366_v31 }
 0x150   : > { %4261 = vst [vmem:[#allocation2 + $0x58] sm:$0xff] %v4209_v50   ;;  %3344 = vmatmul.msk.bf16.gmra.mxu0 %vm459_vm0, %v452_v29  ;;  %v705_v39 = vadd.f32 %v4539_v62, %v662_v59  ;;  %v942_v50 = vpop.permute.xlu2 %941 }
 0x152   : > { %v746_v58 = vmax.f32 %v705_v39, 0.0 }
 0x153   : > { %v4782_v41 = vpop.f32.mrf.mxu3 }
 0x154   : > { %v1033_v8 = vmul.f32 %v927_v2, %v746_v58  ;;  %v4819_v58 = vpop.permute.xlu0 %996 }
 0x155   : > { %v594_v46 = vpop.f32.mrf.mxu0 }
 0x156   : > { %v663_v49 = vmul.f32 %v4528_v56, %v594_v46 }
 0x157   : > { %v4060_v55 = vld [vmem:[#allocation2 + $0x58] sm:$0xff] }
 0x158   : > { %v4086_v57 = vld [vmem:[#allocation2 + $0x58] sm:$0xff]  ;;  %v706_v40 = vadd.f32 %v4539_v62, %v663_v49  ;;  %v1738_v3 = vrot.slane %v4060_v55, 1 }
 0x159   : > { %v2130_v63 = vshrl.u32 %v4086_v57, 16  ;;  %v2133_v0 = vshll.u32 %v4086_v57, 16  ;;  %v4080_v57 = vld [vmem:[%s5298_s3 + $0x118] sm:$0xff] }
 0x15a   : > { %v747_v1 = vmax.f32 %v706_v40, 0.0  ;;  %v1739_v5 = vsel %vm1736_vm2, %v1737_v51, %v1738_v3  ;;  %v4109_v40 = vld [vmem:[%s5298_s3 + $0x1b0] sm:$0xff]  ;;  %v4136_v51 = vld [vmem:[%s5298_s3 + $0x238] sm:$0xff]  ;;  %2013 = vmatpush.bf16.msrb.mxu2 %v4080_v57 }
 0x15b   : > { %v2132_v6 = vrot.slane %v2130_v63, 1  ;;  %v2135_v7 = vrot.slane %v2133_v0, 2  ;;  %1807 = vmatmul.bf16.vlgmr.msrb.gmra.mxu1 %v1739_v5  ;;  %v4789_v11 = vpop.f32.mrf.mxu3  ;;  %2770 = vmatpush.bf16.msrb.mxu3 %v4136_v51  ;;  %v4108_v63 = vld [vmem:[%s5298_s3 + $0x1a8] sm:$0xff]  ;;  %v4135_v0 = vld [vmem:[%s5298_s3 + $0x230] sm:$0xff] }
 0x15c   : > { %v1034_v9 = vmul.f32 %v932_v4, %v747_v1  ;;  %2423 = vmatpush.bf16.msra.mxu1 %v4109_v40 }
 0x15d   : > { %v597_v10 = vpop.f32.mrf.mxu0  ;;  %v2136_v13 = vor.u32 %v2135_v7, %v2132_v6 }
 0x15e   : > { %v4214_v14 = vpack.c.bf16 %v1034_v9, %v1033_v8  ;;  %v664_v15 = vmul.f32 %v4528_v56, %v597_v10 }
 0x15f   : > { %v2137_v54 = vsel %vm1911_vm3, %v2128_v12, %v2136_v13  ;;  %2771 = vmatpush.bf16.msrb.mxu3 %v4135_v0  ;;  %v4107_v12 = vld [vmem:[%s5298_s3 + $0x1a0] sm:$0xff] }
 0x160   : > { %4262 = vst [vmem:[#allocation2 + $0x60] sm:$0xff] %v4214_v14   ;;  %2226 = vmatmul.bf16.vlgmr.msra.gmra.mxu3 %v2137_v54  ;;  %v707_v17 = vadd.f32 %v4539_v62, %v664_v15  ;;  %2424 = vmatpush.bf16.msra.mxu1 %v4108_v63  ;;  %v952_v54 = vpop.permute.xlu0 %951  ;;  %v947_v15 = vpop.permute.xlu2 %946 }
 0x162   : > { %v748_v26 = vmax.f32 %v707_v17, 0.0 }
 0x163   : > { %v4805_v23 = vpop.f32.mrf.mxu3 }
 0x164   : > { %v1035_v37 = vmul.f32 %v937_v33, %v748_v26  ;;  %2425 = vmatpush.bf16.msra.mxu1 %v4107_v12  ;;  %v4106_v26 = vld [vmem:[%s5298_s3 + $0x198] sm:$0xff]  ;;  %v4105_v33 = vld [vmem:[%s5298_s3 + $0x190] sm:$0xff]  ;;  %v4129_v12 = vld [vmem:[%s5298_s3 + $0x200] sm:$0xff] }
 0x165   : > { %v599_v20 = vpop.f32.mrf.mxu0 }
 0x166   : > { %v665_v21 = vmul.f32 %v4528_v56, %v599_v20 }
 0x167   : > { %v4061_v24 = vld [vmem:[#allocation2 + $0x60] sm:$0xff] }
 0x168   : > { %v4087_v25 = vld [vmem:[#allocation2 + $0x60] sm:$0xff]  ;;  %v708_v27 = vadd.f32 %v4539_v62, %v665_v21  ;;  %v1740_v29 = vrot.slane %v4061_v24, 1  ;;  %2426 = vmatpush.bf16.msra.mxu1 %v4106_v26 }
 0x169   : > { %v2139_v30 = vshrl.u32 %v4087_v25, 16  ;;  %v2142_v31 = vshll.u32 %v4087_v25, 16 }
 0x16a   : > { %v749_v32 = vmax.f32 %v708_v27, 0.0  ;;  %v1741_v59 = vsel %vm1736_vm2, %v1738_v3, %v1740_v29  ;;  %v4079_v3 = vld [vmem:[%s5298_s3 + $0x110] sm:$0xff]  ;;  %v4133_v27 = vld [vmem:[%s5298_s3 + $0x220] sm:$0xff] }
 0x16b   : > { %v2141_v34 = vrot.slane %v2139_v30, 1  ;;  %v2144_v35 = vrot.slane %v2142_v31, 2  ;;  %1812 = vmatmul.bf16.gmra.mxu1 %v1741_v59  ;;  %2014 = vmatpush.bf16.msrb.mxu2 %v4079_v3  ;;  %v4103_v3 = vld [vmem:[%s5298_s3 + $0x180] sm:$0xff] }
 0x16c   : > { %v1036_v38 = vmul.f32 %v942_v50, %v749_v32  ;;  %v4132_v50 = vld [vmem:[%s5298_s3 + $0x218] sm:$0xff]  ;;  %2427 = vmatpush.bf16.msra.mxu1 %v4105_v33 }
 0x16d   : > { %v602_v39 = vpop.f32.mrf.mxu0  ;;  %v2145_v44 = vor.u32 %v2144_v35, %v2141_v34  ;;  %v4078_v34 = vld [vmem:[%s5298_s3 + $0x108] sm:$0xff] }
 0x16e   : > { %v4219_v46 = vpack.c.bf16 %v1036_v38, %v1035_v37  ;;  %v666_v55 = vmul.f32 %v4528_v56, %v602_v39  ;;  %v4104_v37 = vld [vmem:[%s5298_s3 + $0x188] sm:$0xff]  ;;  %v4131_v38 = vld [vmem:[%s5298_s3 + $0x210] sm:$0xff] }
 0x16f   : > { %v4812_v48 = vpop.f32.mrf.mxu3  ;;  %v2146_v49 = vsel %vm1911_vm3, %v2136_v13, %v2145_v44  ;;  %v4134_v13 = vld [vmem:[%s5298_s3 + $0x228] sm:$0xff]  ;;  %2015 = vmatpush.bf16.msrb.mxu2 %v4078_v34 }
 0x170   : > { %4263 = vst [vmem:[#allocation2 + $0x68] sm:$0xff] %v4219_v46   ;;  %2231 = vmatmul.bf16.gmra.mxu3 %v2146_v49  ;;  %v709_v60 = vadd.f32 %v4539_v62, %v666_v55  ;;  %2428 = vmatpush.bf16.msra.mxu1 %v4104_v37 }
 0x171   : > { %2772 = vmatpush.bf16.msrb.mxu3 %v4134_v13 }
 0x172   : > { %v750_v6 = vmax.f32 %v709_v60, 0.0 }
 0x174   : > { %v1037_v20 = vmul.f32 %v947_v15, %v750_v6  ;;  %2429 = vmatpush.bf16.msra.mxu1 %v4103_v3  ;;  %v1242_v6 = vpop.f32.mrf.mxu1 }
 0x175   : > { %v604_v61 = vpop.f32.mrf.mxu0  ;;  %2773 = vmatpush.bf16.msrb.mxu3 %v4133_v27 }
 0x176   : > { %v667_v1 = vmul.f32 %v4528_v56, %v604_v61 }
 0x177   : > { %v1264_v2 = vpop.f32.mrf.mxu3  ;;  %v4838_v4 = vld [vmem:[#allocation2 + $0x68] sm:$0xff] }
 0x178   : > { %v4088_v5 = vld [vmem:[#allocation2 + $0x68] sm:$0xff]  ;;  %v710_v7 = vadd.f32 %v4539_v62, %v667_v1  ;;  %v1742_v8 = vrot.slane %v4838_v4, 1 }
 0x179   : > { %v2148_v9 = vshrl.u32 %v4088_v5, 16  ;;  %v2151_v10 = vshll.u32 %v4088_v5, 16  ;;  %2774 = vmatpush.bf16.msrb.mxu3 %v4132_v50  ;;  %v4077_v5 = vld [vmem:[%s5298_s3 + $0x100] sm:$0xff] }
 0x17a   : > { %v751_v14 = vmax.f32 %v710_v7, 0.0  ;;  %v1743_v16 = vsel %vm1736_vm2, %v1740_v29, %v1742_v8  ;;  %2016 = vmatpush.bf16.msrb.mxu2 %v4077_v5 }
 0x17b   : > { %v2150_v17 = vrot.slane %v2148_v9, 1  ;;  %v2153_v19 = vrot.slane %v2151_v10, 2  ;;  %1817 = vmatmul.bf16.gmra.mxu1 %v1743_v16 }
 0x17c   : > { %v1038_v21 = vmul.f32 %v952_v54, %v751_v14 }
 0x17d   : > { %v607_v24 = vpop.f32.mrf.mxu0  ;;  %v2154_v25 = vor.u32 %v2153_v19, %v2150_v17  ;;  %2775 = vmatpush.bf16.msrb.mxu3 %v4131_v38  ;;  %v4902_v17 = vld [vmem:[%s5301_s6 + $0x1] ss:$0 sm:$0xff] }
 0x17e   : > { %v4224_v30 = vpack.c.bf16 %v1038_v21, %v1037_v20  ;;  %v668_v32 = vmul.f32 %v4528_v56, %v607_v24  ;;  %v4123_v20 = vld [vmem:[%s5298_s3 + $0x1f8] sm:$0xff] }
 0x17f   : > { %v1633_v31 = vpop.f32.mrf.mxu3  ;;  %v2155_v29 = vsel %vm1911_vm3, %v2145_v44, %v2154_v25  ;;  %2596 = vmatpush.bf16.msra.mxu2 %v4123_v20 }
 0x180   : > { %4264 = vst [vmem:[#allocation2 + $0x70] sm:$0xff] %v4224_v30   ;;  %2236 = vmatmul.bf16.gmra.mxu3 %v2155_v29  ;;  %v711_v59 = vadd.f32 %v4539_v62, %v668_v32 }
 0x182   : > { %v752_v55 = vmax.f32 %v711_v59, 0.0 }
 0x184   : > { %v1039_v2 = vmul.f32 %v4745_v52, %v752_v55 }
 0x185   : > { %v609_v35 = vpop.f32.mrf.mxu0 }
 0x186   : > { %v669_v39 = vmul.f32 %v4528_v56, %v609_v35  ;;  %v4130_v56 = vld [vmem:[%s5298_s3 + $0x208] sm:$0xff] }
 0x187   : > { %v4874_v44 = vpop.f32.mrf.mxu3  ;;  %v3563_v45 = vld [vmem:[#allocation2 + $0x70] sm:$0xf]  ;;  %v4063_v46 = vld [vmem:[#allocation2 + $0x70] sm:$0x10]  ;;  %2776 = vmatpush.bf16.msrb.mxu3 %v4130_v56  ;;  %v4098_v35 = vld [vmem:[#allocation2 + $0x4] sm:$0xff] }
 0x188   : > { %v3699_v49 = vld [vmem:[#allocation2 + $0x70] sm:$0xf]  ;;  %v712_v57 = vadd.f32 %v4539_v62, %v669_v39  ;;  %v3564_v40 = vor.u32 %v4063_v46, %v3563_v45  ;;  %v4089_v51 = vld [vmem:[#allocation2 + $0x70] sm:$0x30] }
 0x189   : > { %v3700_v60 = vor.u32 %v4089_v51, %v3699_v49  ;;  %v4923_v46 = vld [vmem:[#allocation2 + $0xc] sm:$0xff] }
 0x18a   : > { %v753_v61 = vmax.f32 %v712_v57, 0.0  ;;  %v1744_v63 = vrot.slane %v3564_v40, 1  ;;  %v4122_v49 = vld [vmem:[%s5298_s3 + $0x1f0] sm:$0xff]  ;;  %v2333_v40 = vshll.u32 %v4098_v35, 16 }
 0x18b   : > { %v2157_v0 = vshrl.u32 %v3700_v60, 16  ;;  %v2160_v1 = vshll.u32 %v3700_v60, 16  ;;  %2777 = vmatpush.bf16.msrb.mxu3 %v4129_v12  ;;  %2597 = vmatpush.bf16.msra.mxu2 %v4122_v49  ;;  %v2338_v60 = vshll.u32 %v4923_v46, 16 }
 0x18c   : > { %v1040_v62 = vmul.f32 %v4733_v42, %v753_v61  ;;  %v1745_v4 = vsel %vm1736_vm2, %v1742_v8, %v1744_v63  ;;  %v4895_v42 = vld [vmem:[%s5301_s6] ss:$0 sm:$0xff] }
 0x18d   : > { %v612_v7 = vpop.f32.mrf.mxu0  ;;  %1822 = vmatmul.bf16.gmra.mxu1 %v1745_v4  ;;  %v2159_v9 = vrot.slane %v2157_v0, 1  ;;  %v2162_v10 = vrot.slane %v2160_v1, 2  ;;  %v2335_v1 = vrot.slane %v2333_v40, 1 }
 0x18e   : > { %v4229_v13 = vpack.c.bf16 %v1040_v62, %v1039_v2  ;;  %v670_v8 = vmul.f32 %v4895_v42, %v612_v7  ;;  %v2340_v7 = vrot.slane %v2338_v60, 1 }
 0x18f   : > { %v1638_v52 = vpop.f32.mrf.mxu3  ;;  %v2163_v14 = vor.u32 %v2162_v10, %v2159_v9  ;;  %v4124_v9 = vld [vmem:[#allocation2 + $0x4] sm:$0xf0] }
 0x190   : > { %4265 = vst [vmem:[#allocation2 + $0x78] sm:$0xff] %v4229_v13   ;;  %v1429_v15 = vpop.f32.mrf.mxu2  ;;  %v713_v19 = vadd.f32 %v4902_v17, %v670_v8  ;;  %v4938_v8 = vld [vmem:[#allocation2 + $0xc] sm:$0xff] }
 0x191   : > { %v2164_v54 = vsel %vm1911_vm3, %v2154_v25, %v2163_v14  ;;  %v1462_v16 = vadd.f32 %v1429_v15, %v1242_v6  ;;  %v4911_v25 = vpop.f32.mrf.mxu1  ;;  %v2331_v6 = vshrl.u32 %v4098_v35, 16 }
 0x192   : > { %2241 = vmatmul.bf16.gmra.mxu3 %v2164_v54  ;;  %v754_v30 = vmax.f32 %v713_v19, 0.0 }
 0x193   : > { %v4908_v21 = vadd.f32 %v1633_v31, %v1462_v16  ;;  %v2336_v15 = vor.u32 %v2335_v1, %v2331_v6  ;;  %v3887_v16 = vld [vmem:[#allocation2 + $0x4] sm:$0xe]  ;;  %v2342_v1 = vshrl.u32 %v4923_v46, 16  ;;  %v4968_v6 = vld [vmem:[#allocation2 + $0x14] sm:$0xff] }
 0x194   : > { %v1041_v50 = vmul.f32 %v4735_v43, %v754_v30 }
 0x195   : > { %v614_v24 = vpop.f32.mrf.mxu0 }
 0x196   : > { %v671_v26 = vmul.f32 %v4895_v42, %v614_v24  ;;  %v3888_v24 = vor.u32 %v4124_v9, %v3887_v16 }
 0x197   : > { %v4913_v27 = vpop.f32.mrf.mxu3  ;;  %v3615_v37 = vld [vmem:[#allocation2 + $0x78] sm:$0xe]  ;;  %v4072_v38 = vld [vmem:[#allocation2 + $0x78] sm:$0xf0] }
 0x198   : > { %v714_v29 = vadd.f32 %v4902_v17, %v671_v26  ;;  %v4916_v32 = vpop.f32.mrf.mxu2 }
 0x199   : > { %v1247_v43 = vpop.f32.mrf.mxu1 }
 0x19a   : > { %v755_v33 = vmax.f32 %v714_v29, 0.0  ;;  %v2341_v29 = vsel %vm1327_vm1, %v2336_v15, %v2340_v7 }
 0x19c   : > { %v1042_v59 = vmul.f32 %v4763_v47, %v755_v33  ;;  %v3616_v47 = vor.u32 %v4072_v38, %v3615_v37  ;;  %v2708_v38 = vrot.slane %v3888_v24, 1 }
 0x19d   : > { %v617_v31 = vpop.f32.mrf.mxu0  ;;  %1827 = vmatmul.bf16.gmra.mxu1 %v1744_v63 }
 0x19e   : > { %v4234_v34 = vpack.c.bf16 %v1042_v59, %v1041_v50  ;;  %v672_v45 = vmul.f32 %v4895_v42, %v617_v31  ;;  %v1913_v61 = vshrl.u32 %v3616_v47, 16  ;;  %v1916_v63 = vshll.u32 %v3616_v47, 16 }
 0x19f   : > { %v4920_v39 = vpop.f32.mrf.mxu3  ;;  %v2709_v31 = vrot.slane %v4938_v8, 1 }
 0x1a0   : > { %4266 = vst [vmem:[#allocation2 + $0x80] sm:$0xff] %v4234_v34   ;;  %v1434_v55 = vpop.f32.mrf.mxu2  ;;  %v715_v51 = vadd.f32 %v4902_v17, %v672_v45  ;;  %v1915_v12 = vrot.slane %v1913_v61, 1  ;;  %v1918_v13 = vrot.slane %v1916_v63, 2 }
 0x1a1   : > { %v1464_v57 = vadd.f32 %v1434_v55, %v1247_v43  ;;  %v2710_v49 = vsel %vm1736_vm2, %v2708_v38, %v2709_v31 }
 0x1a2   : > { %2246 = vmatmul.bf16.gmra.mxu3 %v2163_v14  ;;  %v756_v4 = vmax.f32 %v715_v51, 0.0  ;;  %v1919_v50 = vor.u32 %v1918_v13, %v1915_v12  ;;  %v2344_v12 = vor.u32 %v2342_v1, %v2340_v7  ;;  %v4119_v13 = vld [vmem:[%s5298_s3 + $0x1d8] sm:$0xff] }
 0x1a3   : > { %v4930_v3 = vadd.f32 %v1638_v52, %v1464_v57 }
 0x1a4   : > { %v1043_v26 = vmul.f32 %v4779_v36, %v756_v4  ;;  %v4946_v36 = vld [vmem:[#allocation2 + $0x14] sm:$0xff] }
 0x1a5   : > { %v619_v56 = vpop.f32.mrf.mxu0  ;;  %v2346_v57 = vshll.u32 %v4946_v36, 16 }
 0x1a6   : > { %v673_v0 = vmul.f32 %v4895_v42, %v619_v56 }
 0x1a7   : > { %v4933_v2 = vpop.f32.mrf.mxu3  ;;  %v4073_v62 = vld [vmem:[#allocation2 + $0x80] sm:$0xff] }
 0x1a8   : > { %v716_v5 = vadd.f32 %v4902_v17, %v673_v0  ;;  %v4936_v10 = vpop.f32.mrf.mxu2  ;;  %v1921_v52 = vshrl.u32 %v4073_v62, 16  ;;  %v1924_v14 = vshll.u32 %v4073_v62, 16  ;;  %v4120_v62 = vld [vmem:[%s5298_s3 + $0x1e0] sm:$0xff] }
 0x1aa   : > { %v757_v54 = vmax.f32 %v716_v5, 0.0  ;;  %v1923_v19 = vrot.slane %v1921_v52, 1  ;;  %v1926_v20 = vrot.slane %v1924_v14, 2 }
 0x1ac   : > { %v1044_v30 = vmul.f32 %v4785_v53, %v757_v54  ;;  %v1927_v59 = vor.u32 %v1926_v20, %v1923_v19  ;;  %v4121_v53 = vld [vmem:[%s5298_s3 + $0x1e8] sm:$0xff]  ;;  %v2711_v19 = vrot.slane %v4968_v6, 1 }
 0x1ad   : > { %v622_v33 = vpop.f32.mrf.mxu0  ;;  %2430 = vmatmul.bf16.vlgmr.msra.gmra.mxu1 %v2341_v29  ;;  %2598 = vmatpush.bf16.msra.mxu2 %v4121_v53  ;;  %v4118_v29 = vld [vmem:[%s5298_s3 + $0x1d0] sm:$0xff]  ;;  %v4117_v6 = vld [vmem:[%s5298_s3 + $0x1c8] sm:$0xff] }
 0x1ae   : > { %v4239_v34 = vpack.c.bf16 %v1044_v30, %v1043_v26  ;;  %v1928_v37 = vsel %vm1911_vm3, %v1919_v50, %v1927_v59  ;;  %v674_v45 = vmul.f32 %v4895_v42, %v622_v33  ;;  %v4979_v30 = vld [vmem:[#allocation2 + $0x1c] sm:$0xff] }
 0x1af   : > { %v1648_v35 = vpop.f32.mrf.mxu3  ;;  %2017 = vmatmul.bf16.vlgmr.msrb.gmra.mxu2 %v1928_v37 }
 0x1b0   : > { %4267 = vst [vmem:[#allocation2 + $0x88] sm:$0xff] %v4239_v34   ;;  %v1439_v43 = vpop.f32.mrf.mxu2  ;;  %v717_v47 = vadd.f32 %v4902_v17, %v674_v45 }
 0x1b1   : > { %v1466_v55 = vadd.f32 %v1439_v43, %v4772_v28  ;;  %v2348_v28 = vrot.slane %v2346_v57, 1  ;;  %2599 = vmatpush.bf16.msra.mxu2 %v4120_v62  ;;  %v2350_v43 = vshrl.u32 %v4946_v36, 16 }
 0x1b2   : > { %2778 = vmatmul.bf16.vlgmr.msrb.gmra.mxu3 %v2710_v49  ;;  %v758_v63 = vmax.f32 %v717_v47, 0.0  ;;  %v1002_v47 = vpop.permute.xlu1 %1001 }
 0x1b3   : > { %v4956_v40 = vadd.f32 %v4920_v39, %v1466_v55  ;;  %v2349_v54 = vsel %vm1327_vm1, %v2344_v12, %v2348_v28 }
 0x1b4   : > { %v1045_v14 = vmul.f32 %v4796_v18, %v758_v63  ;;  %v2712_v18 = vsel %vm1736_vm2, %v2709_v31, %v2711_v19  ;;  %v2352_v63 = vor.u32 %v2350_v43, %v2348_v28  ;;  %v3767_v28 = vld [vmem:[#allocation2 + $0x24] sm:$0xf] }
 0x1b5   : > { %v624_v51 = vpop.f32.mrf.mxu0  ;;  %2600 = vmatpush.bf16.msra.mxu2 %v4119_v13  ;;  %v5001_v13 = vpop.f32.mrf.mxu1 }
 0x1b6   : > { %v675_v60 = vmul.f32 %v4895_v42, %v624_v51  ;;  %v4127_v51 = vld [vmem:[#allocation2 + $0x1c] sm:$0xff] }
 0x1b7   : > { %v4959_v56 = vpop.f32.mrf.mxu3  ;;  %v4074_v61 = vld [vmem:[#allocation2 + $0x88] sm:$0xff]  ;;  %v2713_v36 = vrot.slane %v4127_v51, 1 }
 0x1b8   : > { %v718_v0 = vadd.f32 %v4902_v17, %v675_v60  ;;  %v4966_v4 = vpop.f32.mrf.mxu2  ;;  %v1930_v39 = vshrl.u32 %v4074_v61, 16  ;;  %v1933_v5 = vshll.u32 %v4074_v61, 16 }
 0x1b9   : > { %2601 = vmatpush.bf16.msra.mxu2 %v4118_v29 }
 0x1ba   : > { %v759_v9 = vmax.f32 %v718_v0, 0.0  ;;  %v1932_v52 = vrot.slane %v1930_v39, 1  ;;  %v1935_v46 = vrot.slane %v1933_v5, 2  ;;  %v4102_v5 = vld [vmem:[#allocation2 + $0x24] sm:$0x10] }
 0x1bc   : > { %v1046_v8 = vmul.f32 %v4803_v22, %v759_v9  ;;  %v1936_v16 = vor.u32 %v1935_v46, %v1932_v52  ;;  %v2714_v52 = vsel %vm1736_vm2, %v2711_v19, %v2713_v36 }
 0x1bd   : > { %v627_v15 = vpop.f32.mrf.mxu0  ;;  %2435 = vmatmul.bf16.gmra.mxu1 %v2349_v54  ;;  %2602 = vmatpush.bf16.msra.mxu2 %v4117_v6  ;;  %v4116_v54 = vld [vmem:[%s5298_s3 + $0x1c0] sm:$0xff] }
 0x1be   : > { %v4244_v20 = vpack.c.bf16 %v1046_v8, %v1045_v14  ;;  %v1937_v24 = vsel %vm1911_vm3, %v1927_v59, %v1936_v16  ;;  %v676_v26 = vmul.f32 %v4895_v42, %v627_v15  ;;  %v2354_v59 = vshll.u32 %v4979_v30, 16  ;;  %v1007_v14 = vpop.permute.xlu1 %1006 }
 0x1bf   : > { %v1653_v7 = vpop.f32.mrf.mxu3  ;;  %2022 = vmatmul.bf16.gmra.mxu2 %v1937_v24  ;;  %v4128_v24 = vld [vmem:[#allocation2 + $0x24] sm:$0x10] }
 0x1c0   : > { %4268 = vst [vmem:[#allocation2 + $0x90] sm:$0xff] %v4244_v20   ;;  %v719_v50 = vadd.f32 %v4902_v17, %v676_v26  ;;  %v2356_v55 = vrot.slane %v2354_v59, 1 }
 0x1c1   : > { %2603 = vmatpush.bf16.msra.mxu2 %v4116_v54 }
 0x1c2   : > { %2783 = vmatmul.bf16.gmra.mxu3 %v2712_v18  ;;  %v1444_v22 = vpop.f32.mrf.mxu2  ;;  %v760_v53 = vmax.f32 %v719_v50, 0.0  ;;  %v2357_v62 = vsel %vm1327_vm1, %v2352_v63, %v2356_v55 }
 0x1c3   : > { %v1468_v33 = vadd.f32 %v1444_v22, %v4789_v11  ;;  %v2358_v22 = vshrl.u32 %v4979_v30, 16 }
 0x1c5   : > { %v629_v34 = vpop.f32.mrf.mxu0  ;;  %v4988_v37 = vadd.f32 %v1648_v35, %v1468_v33  ;;  %v3903_v33 = vld [vmem:[#allocation2 + $0x24] sm:$0xf] }
 0x1c6   : > { %v677_v38 = vmul.f32 %v4895_v42, %v629_v34  ;;  %v1047_v42 = vmul.f32 %v4819_v58, %v760_v53  ;;  %v3768_v58 = vor.u32 %v4102_v5, %v3767_v28  ;;  %v3904_v59 = vor.u32 %v4128_v24, %v3903_v33  ;;  %v4114_v24 = vld [vmem:[#allocation2 + $0x44] sm:$0xff] }
 0x1c7   : > { %v1655_v45 = vpop.f32.mrf.mxu3  ;;  %v4075_v31 = vld [vmem:[#allocation2 + $0x90] sm:$0xff] }
 0x1c8   : > { %v720_v49 = vadd.f32 %v4902_v17, %v677_v38  ;;  %v1939_v11 = vshrl.u32 %v4075_v31, 16  ;;  %v1942_v57 = vshll.u32 %v4075_v31, 16  ;;  %v2362_v15 = vshll.u32 %v3768_v58, 16 }
 0x1c9   : > { %v2360_v38 = vor.u32 %v2358_v22, %v2356_v55  ;;  %v2715_v43 = vrot.slane %v3904_v59, 1  ;;  %v2366_v55 = vshrl.u32 %v3768_v58, 16  ;;  %v2539_v22 = vrot.slane %v4114_v24, 1  ;;  %v4144_v59 = vld [vmem:[%s5299_s4 + $0x38] sm:$0xff] }
 0x1ca   : > { %v761_v60 = vmax.f32 %v720_v49, 0.0  ;;  %v4993_v61 = vpop.f32.mrf.mxu2  ;;  %v1941_v35 = vrot.slane %v1939_v11, 1  ;;  %v1944_v0 = vrot.slane %v1942_v57, 2  ;;  %v2364_v29 = vrot.slane %v2362_v15, 1  ;;  %2939 = vmatpush.bf16.msrb.mxu1 %v4144_v59 }
 0x1cb   : > { %v2716_v11 = vsel %vm1736_vm2, %v2713_v36, %v2715_v43  ;;  %v1467_v24 = vadd.f32 %v4966_v4, %v4782_v41 }
 0x1cc   : > { %v1048_v1 = vmul.f32 %v1002_v47, %v761_v60  ;;  %v1945_v17 = vor.u32 %v1944_v0, %v1941_v35  ;;  %v2368_v35 = vor.u32 %v2366_v55, %v2364_v29 }
 0x1cd   : > { %v632_v39 = vpop.f32.mrf.mxu0  ;;  %2440 = vmatmul.bf16.gmra.mxu1 %v2357_v62  ;;  %v4112_v62 = vld [vmem:[#allocation2 + $0x34] sm:$0xff] }
 0x1ce   : > { %v4249_v9 = vpack.c.bf16 %v1048_v1, %v1047_v42  ;;  %v1946_v12 = vsel %vm1911_vm3, %v1936_v16, %v1945_v17  ;;  %v4111_v1 = vld [vmem:[#allocation2 + $0x2c] sm:$0xf0] }
 0x1cf   : > { %2027 = vmatmul.bf16.gmra.mxu2 %v1946_v12 }
 0x1d0   : > { %4269 = vst [vmem:[#allocation2 + $0x98] sm:$0xff] %v4249_v9  }
 0x1d2   : > { %2788 = vmatmul.bf16.gmra.mxu3 %v2714_v52  ;;  %v1449_v46 = vpop.f32.mrf.mxu2  ;;  %v4113_v52 = vld [vmem:[#allocation2 + $0x3c] sm:$0xff] }
 0x1d3   : > { %v1470_v8 = vadd.f32 %v1449_v46, %v4812_v48 }
 0x1d5   : > { %v1674_v16 = vadd.f32 %v1653_v7, %v1470_v8  ;;  %v634_v20 = vpop.f32.mrf.mxu0  ;;  %v2365_v7 = vsel %vm1327_vm1, %v2360_v38, %v2364_v29 }
 0x1d7   : > { %v3631_v26 = vld [vmem:[#allocation2 + $0x98] sm:$0xf]  ;;  %v4076_v18 = vld [vmem:[#allocation2 + $0x98] sm:$0x30] }
 0x1d8   : > { %v3632_v19 = vor.u32 %v4076_v18, %v3631_v26  ;;  %v1808_v50 = vpop.f32.mrf.mxu1 }
 0x1d9   : > { %v5010_v48 = vadd.f32 %v1808_v50, %v4908_v21  ;;  %v4115_v50 = vld [vmem:[#allocation2 + $0x4c] sm:$0x10] }
 0x1da   : > { %v1451_v34 = vpop.f32.mrf.mxu2  ;;  %v1948_v45 = vshrl.u32 %v3632_v19, 16  ;;  %v1951_v31 = vshll.u32 %v3632_v19, 16 }
 0x1db   : > { %v3835_v34 = vld [vmem:[#allocation2 + $0x4c] sm:$0xf] }
 0x1dc   : > { %v1950_v53 = vrot.slane %v1948_v45, 1  ;;  %v1953_v49 = vrot.slane %v1951_v31, 2  ;;  %v3836_v38 = vor.u32 %v4115_v50, %v3835_v34  ;;  %v1671_v50 = vadd.f32 %v4933_v2, %v1467_v24 }
 0x1dd   : > { %2445 = vmatmul.bf16.gmra.mxu1 %v2365_v7 }
 0x1de   : > { %v1954_v47 = vor.u32 %v1953_v49, %v1950_v53  ;;  %v4143_v49 = vld [vmem:[%s5299_s4 + $0x30] sm:$0xff] }
 0x1df   : > { %2940 = vmatpush.bf16.msrb.mxu1 %v4143_v49 }
 0x1e0   : > { %v1955_v30 = vsel %vm1911_vm3, %v1945_v17, %v1954_v47  ;;  %v5015_v57 = vpop.f32.mrf.mxu1  ;;  %v3819_v17 = vld [vmem:[#allocation2 + $0x2c] sm:$0xe] }
 0x1e1   : > { %2032 = vmatmul.bf16.gmra.mxu2 %v1955_v30  ;;  %v3820_v5 = vor.u32 %v4111_v1, %v3819_v17 }
 0x1e2   : > { %2793 = vmatmul.bf16.gmra.mxu3 %v2716_v11 }
 0x1e3   : > { %v2227_v21 = vpop.f32.mrf.mxu3  ;;  %v2534_v9 = vrot.slane %v3820_v5, 1 }
 0x1e8   : > { %v1813_v51 = vpop.f32.mrf.mxu1 }
 0x1e9   : > { %v5018_v60 = vadd.f32 %v1813_v51, %v4930_v3  ;;  %v2535_v3 = vrot.slane %v4112_v62, 1  ;;  %v4142_v62 = vld [vmem:[%s5299_s4 + $0x28] sm:$0xff] }
 0x1ea   : > { %2941 = vmatpush.bf16.msrb.mxu1 %v4142_v62 }
 0x1eb   : > { %v5020_v63 = vpop.f32.mrf.mxu3  ;;  %v2536_v12 = vsel %vm1736_vm2, %v2534_v9, %v2535_v3 }
 0x1ed   : > { %2450 = vmatmul.bf16.gmra.mxu1 %v2368_v35 }
 0x1f0   : > { %v5022_v0 = vpop.f32.mrf.mxu1 }
 0x1f1   : > { %2037 = vmatmul.bf16.gmra.mxu2 %v1954_v47 }
 0x1f2   : > { %2798 = vmatmul.bf16.gmra.mxu3 %v2715_v43 }
 0x1f3   : > { %v2232_v42 = vpop.f32.mrf.mxu3 }
 0x1f8   : > { %v1818_v39 = vpop.f32.mrf.mxu1 }
 0x1f9   : > { %v5025_v36 = vadd.f32 %v1818_v39, %v4956_v40  ;;  %v2537_v40 = vrot.slane %v4113_v52, 1  ;;  %v4150_v52 = vld [vmem:[%s5300_s5] sm:$0xff] }
 0x1fa   : > { %4278 = vmatpush.bf16.msrb.mxu2 %v4150_v52 }
 0x1fb   : > { %v5027_v6 = vpop.f32.mrf.mxu3  ;;  %v2538_v54 = vsel %vm1736_vm2, %v2535_v3, %v2537_v40  ;;  %v4141_v3 = vld [vmem:[%s5299_s4 + $0x20] sm:$0xff] }
 0x1fc   : > { %2942 = vmatpush.bf16.msrb.mxu1 %v4141_v3 }
 0x200   : > { %v5030_v28 = vpop.f32.mrf.mxu1 }
 0x201   : > { %2604 = vmatmul.bf16.vlgmr.msra.gmra.mxu2 %v2536_v12  ;;  %v1846_v34 = vadd.f32 %v5030_v28, %v1671_v50 }
 0x203   : > { %v5032_v58 = vpop.f32.mrf.mxu3 }
 0x20a   : > { %v1823_v46 = vpop.f32.mrf.mxu1 }
 0x20b   : > { %v5035_v14 = vadd.f32 %v1823_v46, %v4988_v37  ;;  %v5037_v8 = vpop.f32.mrf.mxu3  ;;  %v2540_v37 = vsel %vm1736_vm2, %v2537_v40, %v2539_v22 }
 0x211   : > { %2609 = vmatmul.bf16.gmra.mxu2 %v2538_v54 }
 0x212   : > { %v5040_v15 = vpop.f32.mrf.mxu1 }
 0x215   : > { %v5042_v20 = vpop.f32.mrf.mxu3 }
 0x21a   : > { %v1828_v26 = vpop.f32.mrf.mxu1 }
 0x21b   : > { %v5044_v18 = vadd.f32 %v1828_v26, %v1674_v16  ;;  %v2541_v16 = vrot.slane %v3836_v38, 1 }
 0x21d   : > { %v5046_v29 = vpop.f32.mrf.mxu3  ;;  %v2542_v7 = vsel %vm1736_vm2, %v2539_v22, %v2541_v16 }
 0x221   : > { %2614 = vmatmul.bf16.gmra.mxu2 %v2540_v37 }
 0x222   : > { %v1830_v19 = vpop.f32.mrf.mxu1 }
 0x223   : > { %v4139_v19 = vld [vmem:[%s5299_s4 + $0x10] sm:$0xff] }
 0x225   : > { %v5049_v33 = vpop.f32.mrf.mxu3 }
 0x22a   : > { %v2431_v45 = vpop.f32.mrf.mxu1 }
 0x22d   : > { %v2249_v31 = vpop.f32.mrf.mxu3 }
 0x231   : > { %2619 = vmatmul.bf16.gmra.mxu2 %v2542_v7  ;;  %v1469_v7 = vadd.f32 %v4993_v61, %v4805_v23  ;;  %v4138_v23 = vld [vmem:[%s5299_s4 + $0x8] sm:$0xff] }
 0x232   : > { %v5055_v53 = vpop.f32.mrf.mxu1  ;;  %v2018_v43 = vpop.f32.mrf.mxu2 }
 0x233   : > { %v2051_v47 = vadd.f32 %v2018_v43, %v5010_v48  ;;  %v1673_v43 = vadd.f32 %v4959_v56, %v1469_v7 }
 0x235   : > { %v5061_v30 = vpop.f32.mrf.mxu3  ;;  %v2260_v11 = vadd.f32 %v2227_v21, %v2051_v47 }
 0x237   : > { %v5063_v51 = vadd.f32 %v2431_v45, %v2260_v11 }
 0x23a   : > { %v2436_v55 = vpop.f32.mrf.mxu1  ;;  %v5065_v35 = vpop.f32.mrf.mxu2 }
 0x23d   : > { %v5067_v1 = vpop.f32.mrf.mxu3 }
 0x241   : > { %2624 = vmatmul.bf16.gmra.mxu2 %v2541_v16 }
 0x242   : > { %v5072_v39 = vpop.f32.mrf.mxu1  ;;  %v2023_v48 = vpop.f32.mrf.mxu2 }
 0x243   : > { %v2053_v17 = vadd.f32 %v2023_v48, %v5018_v60  ;;  %v4140_v60 = vld [vmem:[%s5299_s4 + $0x18] sm:$0xff] }
 0x244   : > { %2943 = vmatpush.bf16.msrb.mxu1 %v4140_v60 }
 0x245   : > { %v5075_v5 = vpop.f32.mrf.mxu3  ;;  %v2262_v21 = vadd.f32 %v2232_v42, %v2053_v17 }
 0x247   : > { %v5080_v9 = vadd.f32 %v2436_v55, %v2262_v21  ;;  %v4137_v21 = vld [vmem:[%s5299_s4] sm:$0xff] }
 0x248   : > { %2944 = vmatpush.bf16.msrb.mxu1 %v4139_v19 }
 0x24a   : > { %v2441_v12 = vpop.f32.mrf.mxu1  ;;  %v5085_v46 = vpop.f32.mrf.mxu2 }
 0x24c   : > { %2945 = vmatpush.bf16.msrb.mxu1 %v4138_v23 }
 0x24d   : > { %v5087_v40 = vpop.f32.mrf.mxu3 }
 0x250   : > { %2946 = vmatpush.bf16.msrb.mxu1 %v4137_v21 }
 0x252   : > { %v2443_v42 = vpop.f32.mrf.mxu1  ;;  %v2028_v54 = vpop.f32.mrf.mxu2 }
 0x253   : > { %v2055_v26 = vadd.f32 %v2028_v54, %v5025_v36  ;;  %v4147_v54 = vld [vmem:[%s4383_s18 + $0x88] sm:$0xff] }
 0x254   : > { %3103 = vmatpush.bf16.msra.mxu1 %v4150_v52  ;;  %v3052_v19 = vshll.u32 %v4147_v54, 16 }
 0x255   : > { %v5095_v22 = vpop.f32.mrf.mxu3  ;;  %v2264_v37 = vadd.f32 %v5032_v58, %v2055_v26 }
 0x256   : > { %v3054_v52 = vrot.slane %v3052_v19, 2 }
 0x257   : > { %v5102_v59 = vadd.f32 %v2441_v12, %v2264_v37  ;;  %v3049_v37 = vshrl.u32 %v4147_v54, 16 }
 0x25a   : > { %v2446_v38 = vpop.f32.mrf.mxu1  ;;  %v2030_v45 = vpop.f32.mrf.mxu2 }
 0x25b   : > { %v2056_v41 = vadd.f32 %v2030_v45, %v1846_v34 }
 0x25d   : > { %v5105_v4 = vpop.f32.mrf.mxu3  ;;  %v2265_v36 = vadd.f32 %v5037_v8, %v2056_v41  ;;  %v1848_v8 = vadd.f32 %v5040_v15, %v1673_v43  ;;  %v4148_v43 = vld [vmem:[%s4383_s18 + $0x90] sm:$0xff] }
 0x25f   : > { %v5108_v16 = vadd.f32 %v2443_v42, %v2265_v36  ;;  %v4146_v42 = vld [vmem:[%s4383_s18 + $0x80] sm:$0xff] }
 0x260   : > { %v3043_v26 = vshll.u32 %v4146_v42, 16 }
 0x262   : > { %v2448_v58 = vpop.f32.mrf.mxu1 }
 0x264   : > { %v2033_v31 = vpop.f32.mrf.mxu2 }
 0x265   : > { %v2057_v2 = vadd.f32 %v2033_v31, %v5035_v14  ;;  %v5113_v49 = vpop.f32.mrf.mxu3 }
 0x267   : > { %v2266_v28 = vadd.f32 %v5042_v20, %v2057_v2 }
 0x269   : > { %v5117_v47 = vadd.f32 %v2446_v38, %v2266_v28  ;;  %v3045_v38 = vrot.slane %v3043_v26, 2 }
 0x26a   : > { %v2451_v11 = vpop.f32.mrf.mxu1 }
 0x26c   : > { %v2035_v55 = vpop.f32.mrf.mxu2 }
 0x26d   : > { %v2058_v62 = vadd.f32 %v2035_v55, %v1848_v8  ;;  %v5120_v48 = vpop.f32.mrf.mxu3  ;;  %v3061_v8 = vshll.u32 %v4148_v43, 16 }
 0x26f   : > { %v2267_v61 = vadd.f32 %v5046_v29, %v2058_v62  ;;  %v1463_v29 = vadd.f32 %v4916_v32, %v4911_v25 }
 0x271   : > { %v5126_v14 = vadd.f32 %v2448_v58, %v2267_v61  ;;  %v1667_v50 = vadd.f32 %v4874_v44, %v1463_v29 }
 0x272   : > { %v2453_v56 = vpop.f32.mrf.mxu1 }
 0x273   : > { %v1842_v45 = vadd.f32 %v5015_v57, %v1667_v50  ;;  %v5155_v57 = vld [vmem:[%s5301_s6 + $0x2] ss:$0 sm:$0xff] }
 0x274   : > { %v2038_v20 = vpop.f32.mrf.mxu2 }
 0x275   : > { %v2059_v17 = vadd.f32 %v2038_v20, %v5044_v18  ;;  %v5129_v15 = vpop.f32.mrf.mxu3  ;;  %v3040_v18 = vshrl.u32 %v4146_v42, 16  ;;  %v2052_v32 = vadd.f32 %v5065_v35, %v1842_v45  ;;  %v1465_v35 = vadd.f32 %v4936_v10, %v5001_v13 }
 0x276   : > { %v3063_v10 = vrot.slane %v3061_v8, 2 }
 0x277   : > { %v2268_v3 = vadd.f32 %v5049_v33, %v2059_v17  ;;  %v3042_v34 = vrot.slane %v3040_v18, 1  ;;  %v3051_v33 = vrot.slane %v3049_v37, 1  ;;  %v2261_v44 = vadd.f32 %v5020_v63, %v2052_v32  ;;  %v5165_v63 = vld [vmem:[%s5301_s6 + $0x3] ss:$0 sm:$0xff] }
 0x278   : > { %v1669_v55 = vadd.f32 %v4913_v27, %v1465_v35 }
 0x279   : > { %v5135_v12 = vadd.f32 %v2451_v11, %v2268_v3  ;;  %v5143_v41 = vor.u32 %v3045_v38, %v3042_v34  ;;  %v3055_v25 = vor.u32 %v3054_v52, %v3051_v33  ;;  %v2465_v2 = vadd.f32 %v5055_v53, %v2261_v44 }
 0x27a   : > { %v3058_v11 = vshrl.u32 %v4148_v43, 16  ;;  %v1844_v13 = vadd.f32 %v5022_v0, %v1669_v55 }
 0x27b   : > { %v3056_v58 = vsel %vm1911_vm3, %v5143_v41, %v3055_v25 }
 0x27c   : > { %v2040_v60 = vpop.f32.mrf.mxu2  ;;  %3994 = vmatmul.msk.bf16.vlgmr.msrb.gmra.mxu2 %vm459_vm0, %v3056_v58  ;;  %v3060_v23 = vrot.slane %v3058_v11, 1  ;;  %v2054_v20 = vadd.f32 %v5085_v46, %v1844_v13  ;;  %v3987_v46 = vld [vmem:[%s4383_s18 + $0x98] sm:$0xf] }
 0x27d   : > { %v2801_v24 = vpop.f32.mrf.mxu3 }
 0x27e   : > { %v3064_v56 = vor.u32 %v3063_v10, %v3060_v23  ;;  %v2263_v0 = vadd.f32 %v5027_v6, %v2054_v20  ;;  %v4149_v24 = vld [vmem:[%s4383_s18 + $0x98] sm:$0x30] }
 0x27f   : > { %v3988_v26 = vor.u32 %v4149_v24, %v3987_v46 }
 0x280   : > { %v3065_v27 = vsel %vm1911_vm3, %v3055_v25, %v3064_v56  ;;  %v2467_v54 = vadd.f32 %v5072_v39, %v2263_v0 }
 0x281   : > { %v3067_v50 = vshrl.u32 %v3988_v26, 16  ;;  %v3070_v34 = vshll.u32 %v3988_v26, 16 }
 0x283   : > { %v3069_v38 = vrot.slane %v3067_v50, 1  ;;  %v3072_v33 = vrot.slane %v3070_v34, 2 }
 0x284   : > { %v2605_v36 = vpop.f32.mrf.mxu2 }
 0x285   : > { %v2638_v31 = vadd.f32 %v2605_v36, %v5063_v51  ;;  %v3073_v52 = vor.u32 %v3072_v33, %v3069_v38 }
 0x287   : > { %v2812_v7 = vadd.f32 %v5061_v30, %v2638_v31  ;;  %v3074_v25 = vsel %vm1911_vm3, %v3064_v56, %v3073_v52 }
 0x289   : > { %v2841_v51 = vmul.f32 %v5155_v57, %v2812_v7 }
 0x28b   : > { %v2852_v53 = vadd.f32 %v5165_v63, %v2841_v51 }
 0x28c   : > { %v2607_v28 = vpop.f32.mrf.mxu2  ;;  %3995 = vmatmul.msk.bf16.gmra.mxu2 %vm459_vm0, %v3065_v27 }
 0x28d   : > { %v2639_v30 = vadd.f32 %v2607_v28, %v2465_v2  ;;  %v2861_v3 = vmax.f32 %v2852_v53, 0.0 }
 0x28f   : > { %v2813_v62 = vadd.f32 %v5067_v1, %v2639_v30 }
 0x291   : > { %v2842_v61 = vmul.f32 %v5155_v57, %v2813_v62 }
 0x293   : > { %v2853_v17 = vadd.f32 %v5165_v63, %v2842_v61 }
 0x294   : > { %v2610_v21 = vpop.f32.mrf.mxu2 }
 0x295   : > { %v2862_v1 = vmax.f32 %v2853_v17, 0.0  ;;  %v2640_v29 = vadd.f32 %v2610_v21, %v5080_v9 }
 0x297   : > { %v2870_v60 = vpack.c.bf16 %v2862_v1, %v2861_v3  ;;  %v2814_v42 = vadd.f32 %v5075_v5, %v2640_v29  ;;  %v3971_v3 = vld [vmem:[%s4383_s18 + $0x78] sm:$0xe]  ;;  %v4145_v1 = vld [vmem:[%s4383_s18 + $0x78] sm:$0xf0] }
 0x298   : > { %v3972_v29 = vor.u32 %v4145_v1, %v3971_v3 }
 0x299   : > { %2947 = vmatmul.bf16.vlgmr.msrb.gmra.mxu1 %v2870_v60  ;;  %v2843_v37 = vmul.f32 %v5155_v57, %v2814_v42 }
 0x29a   : > { %v3032_v60 = vshrl.u32 %v3972_v29, 16  ;;  %v3035_v42 = vshll.u32 %v3972_v29, 16 }
 0x29b   : > { %v2854_v5 = vadd.f32 %v5165_v63, %v2843_v37 }
 0x29c   : > { %v2612_v18 = vpop.f32.mrf.mxu2  ;;  %3996 = vmatmul.msk.bf16.gmra.mxu2 %vm459_vm0, %v3074_v25 }
 0x29d   : > { %v2641_v19 = vadd.f32 %v2612_v18, %v2467_v54  ;;  %v2863_v36 = vmax.f32 %v2854_v5, 0.0  ;;  %v3037_v54 = vrot.slane %v3035_v42, 2  ;;  %v5223_v18 = vld [vmem:[%s5302_s7 + $0x1] ss:$0 sm:$0xff]  ;;  %v5242_v5 = vld [vmem:[%s5302_s7 + $0x3] ss:$0 sm:$0xff] }
 0x29f   : > { %v2815_v9 = vadd.f32 %v5087_v40, %v2641_v19 }
 0x2a1   : > { %v2844_v6 = vmul.f32 %v5155_v57, %v2815_v9  ;;  %v5233_v9 = vld [vmem:[%s5302_s7 + $0x2] ss:$0 sm:$0xff] }
 0x2a3   : > { %v2855_v39 = vadd.f32 %v5165_v63, %v2844_v6 }
 0x2a4   : > { %v2615_v45 = vpop.f32.mrf.mxu2 }
 0x2a5   : > { %v2642_v32 = vadd.f32 %v2615_v45, %v5102_v59  ;;  %v2864_v58 = vmax.f32 %v2855_v39, 0.0 }
 0x2a7   : > { %v2871_v31 = vpack.c.bf16 %v2864_v58, %v2863_v36  ;;  %v2816_v40 = vadd.f32 %v5095_v22, %v2642_v32 }
 0x2a9   : > { %2952 = vmatmul.bf16.gmra.mxu1 %v2871_v31  ;;  %v2845_v7 = vmul.f32 %v5155_v57, %v2816_v40 }
 0x2ab   : > { %v2856_v43 = vadd.f32 %v5165_v63, %v2845_v7 }
 0x2ac   : > { %v2617_v44 = vpop.f32.mrf.mxu2  ;;  %3997 = vmatmul.msk.bf16.gmra.mxu2 %vm459_vm0, %v3073_v52 }
 0x2ad   : > { %v2643_v35 = vadd.f32 %v2617_v44, %v5108_v16  ;;  %v2865_v11 = vmax.f32 %v2856_v43, 0.0 }
 0x2af   : > { %v2817_v2 = vadd.f32 %v5105_v4, %v2643_v35 }
 0x2b1   : > { %v2846_v28 = vmul.f32 %v5155_v57, %v2817_v2 }
 0x2b3   : > { %v2857_v59 = vadd.f32 %v5165_v63, %v2846_v28 }
 0x2b4   : > { %v2620_v51 = vpop.f32.mrf.mxu2 }
 0x2b5   : > { %v2644_v30 = vadd.f32 %v2620_v51, %v5117_v47  ;;  %v2866_v8 = vmax.f32 %v2857_v59, 0.0 }
 0x2b7   : > { %v2872_v22 = vpack.c.bf16 %v2866_v8, %v2865_v11  ;;  %v2818_v55 = vadd.f32 %v5113_v49, %v2644_v30 }
 0x2b9   : > { %2957 = vmatmul.bf16.gmra.mxu1 %v2872_v22  ;;  %v2847_v4 = vmul.f32 %v5155_v57, %v2818_v55 }
 0x2bb   : > { %v2858_v47 = vadd.f32 %v5165_v63, %v2847_v4 }
 0x2bc   : > { %v2622_v16 = vpop.f32.mrf.mxu2 }
 0x2bd   : > { %v2645_v62 = vadd.f32 %v2622_v16, %v5126_v14  ;;  %v2867_v49 = vmax.f32 %v2858_v47, 0.0 }
 0x2bf   : > { %v2819_v23 = vadd.f32 %v5120_v48, %v2645_v62 }
 0x2c1   : > { %v2848_v10 = vmul.f32 %v5155_v57, %v2819_v23 }
 0x2c3   : > { %v2859_v13 = vadd.f32 %v5165_v63, %v2848_v10 }
 0x2c4   : > { %v2625_v53 = vpop.f32.mrf.mxu2 }
 0x2c5   : > { %v2646_v61 = vadd.f32 %v2625_v53, %v5135_v12  ;;  %v2868_v56 = vmax.f32 %v2859_v13, 0.0  ;;  %v3034_v12 = vrot.slane %v3032_v60, 1 }
 0x2c7   : > { %v2820_v20 = vadd.f32 %v5129_v15, %v2646_v61  ;;  %v2873_v17 = vpack.c.bf16 %v2868_v56, %v2867_v49  ;;  %v3038_v46 = vor.u32 %v3037_v54, %v3034_v12 }
 0x2c9   : > { %v2849_v14 = vmul.f32 %v5155_v57, %v2820_v20  ;;  %2962 = vmatmul.bf16.gmra.mxu1 %v2873_v17  ;;  %v3047_v15 = vsel %vm1911_vm3, %v3038_v46, %v5143_v41 }
 0x2cb   : > { %v2860_v48 = vadd.f32 %v5165_v63, %v2849_v14  ;;  %v5218_v63 = vld [vmem:[%s5302_s7] ss:$0 sm:$0xff] }
 0x2cc   : > { %v2627_v21 = vpop.f32.mrf.mxu2 }
 0x2cd   : > { %v2869_v27 = vmax.f32 %v2860_v48, 0.0 }
 0x2cf   : > { %v2874_v0 = vpack.c.bf16 %v2869_v27, %v2869_v27 }
 0x2d9   : > { %2967 = vmatmul.bf16.gmra.mxu1 %v2874_v0 }
 0x2e9   : > { %3993 = vmatmul.msk.bf16.vlgmr.msra.gmra.mxu1 %vm459_vm0, %v3047_v15 }
 0x2ff   : > { %v3110_v57 = vpop.f32.mrf.mxu2 }
 0x300   : > { %v3133_v6 = vmul.f32 %v5233_v9, %v3110_v57 }
 0x302   : > { %v3144_v45 = vadd.f32 %v5242_v5, %v3133_v6 }
 0x307   : > { %v3112_v24 = vpop.f32.mrf.mxu2 }
 0x308   : > { %v3134_v58 = vmul.f32 %v5233_v9, %v3112_v24 }
 0x30a   : > { %v3145_v7 = vadd.f32 %v5242_v5, %v3134_v58 }
 0x30f   : > { %v3115_v19 = vpop.f32.mrf.mxu2 }
 0x310   : > { %v3135_v43 = vmul.f32 %v5233_v9, %v3115_v19 }
 0x312   : > { %v3146_v11 = vadd.f32 %v5242_v5, %v3135_v43 }
 0x316   : > { %v2948_v26 = vpop.f32.mrf.mxu1 }
 0x317   : > { %v2974_v37 = vmul.f32 %v5218_v63, %v2948_v26  ;;  %v3117_v38 = vpop.f32.mrf.mxu2 }
 0x318   : > { %v3136_v16 = vmul.f32 %v5233_v9, %v3117_v38 }
 0x319   : > { %v5227_v41 = vadd.f32 %v5223_v18, %v2974_v37 }
 0x31a   : > { %v3147_v10 = vadd.f32 %v5242_v5, %v3136_v16 }
 0x31e   : > { %v2950_v50 = vpop.f32.mrf.mxu1 }
 0x31f   : > { %v2975_v34 = vmul.f32 %v5218_v63, %v2950_v50  ;;  %v3120_v25 = vpop.f32.mrf.mxu2 }
 0x320   : > { %v3137_v61 = vmul.f32 %v5233_v9, %v3120_v25 }
 0x321   : > { %v5236_v33 = vadd.f32 %v5223_v18, %v2975_v34 }
 0x322   : > { %v3148_v17 = vadd.f32 %v5242_v5, %v3137_v61 }
 0x326   : > { %v2953_v52 = vpop.f32.mrf.mxu1 }
 0x327   : > { %v2976_v39 = vmul.f32 %v5218_v63, %v2953_v52  ;;  %v3122_v35 = vpop.f32.mrf.mxu2 }
 0x328   : > { %v3138_v21 = vmul.f32 %v5233_v9, %v3122_v35 }
 0x329   : > { %v2987_v32 = vadd.f32 %v5223_v18, %v2976_v39 }
 0x32a   : > { %v3149_v29 = vadd.f32 %v5242_v5, %v3138_v21 }
 0x32b   : > { %v3153_v36 = vadd.f32 %v3144_v45, %v2987_v32 }
 0x32d   : > { %v3162_v31 = vmax.f32 %v3153_v36, 0.0 }
 0x32e   : > { %v2955_v40 = vpop.f32.mrf.mxu1 }
 0x32f   : > { %3171 = vst [vmem:[%s5252_s12 + $0x10] sm:$0xff] %v3162_v31  ;;  %v2977_v44 = vmul.f32 %v5218_v63, %v2955_v40  ;;  %v3125_v8 = vpop.f32.mrf.mxu2 }
 0x330   : > { %v3139_v42 = vmul.f32 %v5233_v9, %v3125_v8 }
 0x331   : > { %v2988_v2 = vadd.f32 %v5223_v18, %v2977_v44 }
 0x332   : > { %v3150_v15 = vadd.f32 %v5242_v5, %v3139_v42 }
 0x333   : > { %v3154_v28 = vadd.f32 %v3145_v7, %v2988_v2 }
 0x335   : > { %v3163_v59 = vmax.f32 %v3154_v28, 0.0 }
 0x336   : > { %v2958_v51 = vpop.f32.mrf.mxu1 }
 0x337   : > { %3172 = vst [vmem:[%s5252_s12 + $0x18] sm:$0xff] %v3163_v59  ;;  %v2978_v30 = vmul.f32 %v5218_v63, %v2958_v51  ;;  %v3127_v47 = vpop.f32.mrf.mxu2 }
 0x339   : > { %v2989_v22 = vadd.f32 %v5223_v18, %v2978_v30 }
 0x33b   : > { %v3155_v55 = vadd.f32 %v3146_v11, %v2989_v22 }
 0x33d   : > { %v3164_v4 = vmax.f32 %v3155_v55, 0.0 }
 0x33e   : > { %v2960_v62 = vpop.f32.mrf.mxu1 }
 0x33f   : > { %3173 = vst [vmem:[%s5252_s12 + $0x20] sm:$0xff] %v3164_v4  ;;  %v2979_v23 = vmul.f32 %v5218_v63, %v2960_v62 }
 0x341   : > { %v2990_v13 = vadd.f32 %v5223_v18, %v2979_v23 }
 0x343   : > { %v3156_v53 = vadd.f32 %v3147_v10, %v2990_v13 }
 0x345   : > { %v3165_v49 = vmax.f32 %v3156_v53, 0.0 }
 0x346   : > { %v2963_v56 = vpop.f32.mrf.mxu1 }
 0x347   : > { %3174 = vst [vmem:[%s5252_s12 + $0x28] sm:$0xff] %v3165_v49  ;;  %v2980_v20 = vmul.f32 %v5218_v63, %v2963_v56 }
 0x349   : > { %v2991_v14 = vadd.f32 %v5223_v18, %v2980_v20 }
 0x34b   : > { %v3157_v48 = vadd.f32 %v3148_v17, %v2991_v14 }
 0x34d   : > { %v3166_v27 = vmax.f32 %v3157_v48, 0.0 }
 0x34e   : > { %v2965_v3 = vpop.f32.mrf.mxu1 }
 0x34f   : > { %3175 = vst [vmem:[%s5252_s12 + $0x30] sm:$0xff] %v3166_v27  ;;  %v2981_v1 = vmul.f32 %v5218_v63, %v2965_v3 }
 0x351   : > { %v2992_v0 = vadd.f32 %v5223_v18, %v2981_v1 }
 0x353   : > { %v3158_v60 = vadd.f32 %v3149_v29, %v2992_v0 }
 0x355   : > { %v3167_v12 = vmax.f32 %v3158_v60, 0.0 }
 0x356   : > { %v2968_v54 = vpop.f32.mrf.mxu1 }
 0x357   : > { %3176 = vst [vmem:[%s5252_s12 + $0x38] sm:$0xff] %v3167_v12  ;;  %v2982_v46 = vmul.f32 %v5218_v63, %v2968_v54 }
 0x359   : > { %v2993_v57 = vadd.f32 %v5223_v18, %v2982_v46 }
 0x35b   : > { %v3159_v24 = vadd.f32 %v3150_v15, %v2993_v57 }
 0x35d   : > { %v3168_v26 = vmax.f32 %v3159_v24, 0.0 }
 0x35e   : > { %v2970_v37 = vpop.f32.mrf.mxu1 }
 0x35f   : > { %3177 = vst [vmem:[%s5252_s12 + $0x40] sm:$0xff] %v3168_v26 }
 0x366   : > { %v3105_v19 = vpop.f32.mrf.mxu1 }
 0x367   : > { %v3131_v50 = vmul.f32 %v5233_v9, %v3105_v19 }
 0x369   : > { %v3142_v34 = vadd.f32 %v5242_v5, %v3131_v50 }
 0x36b   : > { %v3151_v38 = vadd.f32 %v3142_v34, %v5227_v41 }
 0x36d   : > { %v3160_v6 = vmax.f32 %v3151_v38, 0.0 }
 0x36e   : > { %v3107_v52 = vpop.f32.mrf.mxu1 }
 0x36f   : > { %3169 = vst [vmem:[%s5252_s12] sm:$0xff] %v3160_v6  ;;  %v3132_v63 = vmul.f32 %v5233_v9, %v3107_v52 }
 0x371   : > { %v3143_v39 = vadd.f32 %v5242_v5, %v3132_v63 }
 0x373   : > { %v3152_v18 = vadd.f32 %v3143_v39, %v5236_v33 }
 0x375   : > { %v3161_v45 = vmax.f32 %v3152_v18, 0.0 }
 0x377   : > { %3170 = vst [vmem:[%s5252_s12 + $0x8] sm:$0xff] %v3161_v45 }
 0x378 PF: > { %s18_s27 = sadd.s32 1, %s4309_s27  }
 0x379   : > { %p15_p4 = scmp.ge.s32.totalorder %s18_s27, 4  }
 0x37b   :  { %17 = sbr.rel (!%p15_p4) target bundleno = 1 (0x1), region = 90 }

</bundles_post_ra>
